<compile_context>
chip_gen: v7x
topology: tpu7x:2x2x1
jax: 0.10.0
libtpu: 0.0.40
codegen_flags: <defaults>
</compile_context>

<pallas_src>
import math
import functools

import numpy as np
import jax
import jax.numpy as jnp
from jax import lax
from jax.experimental import pallas as pl
from jax.experimental.pallas import tpu as pltpu


# ----------------------------- in-kernel helpers ------------------------------

def _silu(x):
    # x * sigmoid(x); the divide goes to the EUP via approx reciprocal.
    return x * pl.reciprocal(1.0 + jnp.exp(-x), approx=True)


def _softplus(x):
    # numerically stable softplus (exp/log only)
    return jnp.maximum(x, 0.0) + jnp.log(1.0 + jnp.exp(-jnp.abs(x)))


def _linear(x, w, dtype=jnp.float32):
    # y = x @ w.T  (F.linear semantics), NT matmul, fp32 accumulation.
    return lax.dot_general(x.astype(dtype), w.astype(dtype),
                           (((1,), (1,)), ((), ())),
                           preferred_element_type=jnp.float32)


# ----------------------------- Pallas kernel ----------------------------------

def bimamba_kernel(h_ref,         # (TL, d_model)
                   w_in_ref,      # (2*d_inner, d_model)
                   conv_w_ref,    # (d_conv, d_inner)
                   conv_b_ref,    # (1, d_inner)
                   w_xdt_ref,     # (dt_rank_pad, d_inner)   (zero padded)
                   dt_w_ref,      # (d_inner, dt_rank_pad)   (zero padded)
                   dt_b_ref,      # (1, d_inner)
                   w_xbc_ref,     # (2*d_state, d_inner)
                   A_T_ref,       # (d_state, d_inner)   A^T = (-exp(A_log))^T
                   D_ref,         # (1, d_inner)
                   out_w_ref,     # (d_model, d_inner)
                   o_ref,         # (TL, d_model)
                   xpad_scr,      # (TL + d_conv - 1, d_inner)  conv input + carry
                   delta_scr,     # (TL, d_inner)
                   u_scr,         # (TL, d_inner)
                   bcT_scr,       # (2*d_state, TL)
                   y_scr,         # (TL, d_inner)
                   state_scr,     # (d_state, d_inner)  carried SSM state
                   *, d_inner, d_state, d_conv, tl, unroll, mxu_dtype):
    lc = pl.program_id(1)

    # ---- (re)initialize carried scratch at the first L-chunk of a batch row --
    @pl.when(lc == 0)
    def _():
        state_scr[...] = jnp.zeros((d_state, d_inner), jnp.float32)
        xpad_scr[0:d_conv - 1, :] = jnp.zeros((d_conv - 1, d_inner), jnp.float32)

    @pl.when(lc != 0)
    def _():
        # conv carry: last (d_conv-1) rows of the previous chunk's conv input
        xpad_scr[0:d_conv - 1, :] = xpad_scr[tl:tl + d_conv - 1, :]

    h = h_ref[...].astype(jnp.float32)                        # (TL, d_model)

    # ---- in_proj -------------------------------------------------------------
    xz = _linear(h, w_in_ref[...], mxu_dtype)                 # (TL, 2*d_inner)
    x = xz[:, :d_inner]
    z = xz[:, d_inner:]

    # ---- depthwise causal conv1d + SiLU (through the carry scratch) ----------
    xpad_scr[d_conv - 1:d_conv - 1 + tl, :] = x
    acc = jnp.zeros((tl, d_inner), jnp.float32)
    for k in range(d_conv):                                   # static, d_conv=4
        acc = acc + xpad_scr[k:k + tl, :] * conv_w_ref[k:k + 1, :]
    xconv = _silu(acc + conv_b_ref[...])                      # (TL, d_inner)

    # ---- x_proj (dt part, lane-dense 128-padded) + dt_proj + softplus --------
    dt_low = _linear(xconv, w_xdt_ref[...], mxu_dtype)        # (TL, dt_rank_pad)
    delta = _softplus(_linear(dt_low, dt_w_ref[...], mxu_dtype)
                      + dt_b_ref[...])                        # (TL, d_inner)

    # ---- x_proj (B, C part), produced directly in (2*d_state, TL) layout -----
    bcT_scr[...] = _linear(w_xbc_ref[...], xconv, mxu_dtype)  # (2*d_state, TL)

    delta_scr[...] = delta
    u_scr[...] = delta * xconv

    # ---- fused selective scan: state (d_state, d_inner), d_inner on lanes ----
    A_T = A_T_ref[...]                                        # (d_state, d_inner)
    t_iota = lax.broadcasted_iota(jnp.int32, (1, tl), 1)      # hoisted

    def step(l, s):
        onehot = (t_iota == l).astype(jnp.float32)            # (1, TL)
        bc = jnp.sum(bcT_scr[...] * onehot, axis=1, keepdims=True)  # (2*d_state,1)
        b_col = bc[:d_state, :]                               # (d_state, 1)
        c_col = bc[d_state:, :]                               # (d_state, 1)
        delta_l = delta_scr[pl.ds(l, 1), :]                   # (1, d_inner)
        u_l = u_scr[pl.ds(l, 1), :]                           # (1, d_inner)
        s = jnp.exp(delta_l * A_T) * s + b_col * u_l          # (d_state, d_inner)
        y_scr[pl.ds(l, 1), :] = jnp.sum(s * c_col, axis=0, keepdims=True)
        return s

    s_final = lax.fori_loop(0, tl, step, state_scr[...], unroll=unroll)
    state_scr[...] = s_final

    # ---- skip term, gate, out_proj -------------------------------------------
    y = y_scr[...] + xconv * D_ref[...]
    y = y * _silu(z)
    o_ref[...] = _linear(y, out_w_ref[...], mxu_dtype).astype(o_ref.dtype)


# ----------------------------- wrapper -----------------------------------------

def _choose_chunk(L, target):
    if L <= target:
        return L
    for tl in range(min(target, L), 7, -1):
        if L % tl == 0 and tl % 8 == 0:
            return tl
    return L


def bimamba_forward(hidden_states, params, *, seq_chunk=256, mxu_dtype=jnp.float32):
    B, L, D = hidden_states.shape
    w_in = params["in_proj_w"].astype(jnp.float32)      # (2*d_inner, d_model)
    conv_w = params["conv_w"].astype(jnp.float32)       # (d_inner, d_conv)
    conv_b = params["conv_b"].astype(jnp.float32)       # (d_inner,)
    x_proj_w = params["x_proj_w"].astype(jnp.float32)   # (dt_rank+2*d_state, d_inner)
    dt_w = params["dt_proj_w"].astype(jnp.float32)      # (d_inner, dt_rank)
    dt_b = params["dt_proj_b"].astype(jnp.float32)      # (d_inner,)
    A_log = params["A_log"].astype(jnp.float32)         # (d_inner, d_state)
    Dp = params["D"].astype(jnp.float32)                # (d_inner,)
    out_w = params["out_proj_w"].astype(jnp.float32)    # (d_model, d_inner)

    d_inner, d_conv = conv_w.shape
    d_state = A_log.shape[1]
    dt_rank = dt_w.shape[1]

    # lane-dense padding of the dt path (x_proj output width -> multiple of 128)
    dt_rank_pad = ((dt_rank + 127) // 128) * 128
    w_xdt_pad = jnp.zeros((dt_rank_pad, d_inner), jnp.float32
                          ).at[:dt_rank, :].set(x_proj_w[:dt_rank, :])
    dt_w_pad = jnp.zeros((d_inner, dt_rank_pad), jnp.float32
                         ).at[:, :dt_rank].set(dt_w)
    w_xbc = x_proj_w[dt_rank:dt_rank + 2 * d_state, :]   # (2*d_state, d_inner)

    A_T = (-jnp.exp(A_log)).T                            # (d_state, d_inner)
    conv_w_t = conv_w.T                                  # (d_conv, d_inner)
    conv_b2 = conv_b.reshape(1, d_inner)
    dt_b2 = dt_b.reshape(1, d_inner)
    D2 = Dp.reshape(1, d_inner)

    tl = _choose_chunk(L, seq_chunk)
    n_chunks = L // tl
    unroll = 8 if tl % 8 == 0 else (4 if tl % 4 == 0 else 1)

    kern = functools.partial(bimamba_kernel, d_inner=d_inner, d_state=d_state,
                             d_conv=d_conv, tl=tl, unroll=unroll,
                             mxu_dtype=mxu_dtype)

    def _const_spec(shape):
        zeros = (0,) * len(shape)
        return pl.BlockSpec(shape, lambda b, lc: zeros)

    # VMEM budget + scheduler cost hint
    weight_elems = (w_in.size + conv_w_t.size + conv_b2.size + w_xdt_pad.size
                    + dt_w_pad.size + dt_b2.size + w_xbc.size + A_T.size
                    + D2.size + out_w.size)
    scratch_elems = ((tl + d_conv - 1) * d_inner + 3 * tl * d_inner
                     + 2 * d_state * tl + d_state * d_inner)
    est_bytes = 4 * (2 * weight_elems + 4 * tl * D + scratch_elems
                     + 6 * tl * d_inner)
    vmem_limit = int(min(100 * 2 ** 20, max(16 * 2 ** 20, 2 * est_bytes)))

    flops = 2 * B * L * (D * 2 * d_inner + d_inner * dt_rank_pad
                         + dt_rank_pad * d_inner + d_inner * 2 * d_state
                         + d_inner * D)
    flops += B * L * d_inner * (8 * d_state + 2 * d_conv + 12)
    transcendentals = B * L * d_inner * (d_state + 4)
    bytes_accessed = 4 * (2 * B * L * D + weight_elems)
    cost = pl.CostEstimate(flops=int(flops), transcendentals=int(transcendentals),
                           bytes_accessed=int(bytes_accessed))

    out = pl.pallas_call(
        kern,
        out_shape=jax.ShapeDtypeStruct((B, L, D), jnp.float32),
        grid=(B, n_chunks),
        in_specs=[
            pl.BlockSpec((None, tl, D), lambda b, lc: (b, lc, 0)),  # hidden_states
            _const_spec(w_in.shape),
            _const_spec(conv_w_t.shape),
            _const_spec(conv_b2.shape),
            _const_spec(w_xdt_pad.shape),
            _const_spec(dt_w_pad.shape),
            _const_spec(dt_b2.shape),
            _const_spec(w_xbc.shape),
            _const_spec(A_T.shape),
            _const_spec(D2.shape),
            _const_spec(out_w.shape),
        ],
        out_specs=pl.BlockSpec((None, tl, D), lambda b, lc: (b, lc, 0)),
        scratch_shapes=[
            pltpu.VMEM((tl + d_conv - 1, d_inner), jnp.float32),  # conv input+carry
            pltpu.VMEM((tl, d_inner), jnp.float32),               # delta
            pltpu.VMEM((tl, d_inner), jnp.float32),               # u = delta*x
            pltpu.VMEM((2 * d_state, tl), jnp.float32),           # [B;C]^T
            pltpu.VMEM((tl, d_inner), jnp.float32),               # y
            pltpu.VMEM((d_state, d_inner), jnp.float32),          # carried SSM state
        ],
        compiler_params=pltpu.CompilerParams(
            dimension_semantics=("parallel", "arbitrary"),
            vmem_limit_bytes=vmem_limit),
        cost_estimate=cost,
    )(hidden_states, w_in, conv_w_t, conv_b2, w_xdt_pad, dt_w_pad, dt_b2,
      w_xbc, A_T, D2, out_w)
    return out


# ----------------------------- plain-JAX reference ------------------------------

def bimamba_reference(h, params):
    B, L, D = h.shape
    w_in = params["in_proj_w"]; conv_w = params["conv_w"]; conv_b = params["conv_b"]
    x_proj_w = params["x_proj_w"]; dt_w = params["dt_proj_w"]; dt_b = params["dt_proj_b"]
    A = -jnp.exp(params["A_log"]); Dp = params["D"]; out_w = params["out_proj_w"]
    d_inner, d_conv = conv_w.shape
    d_state = A.shape[1]; dt_rank = dt_w.shape[1]

    xz = jnp.einsum("bld,ed->ble", h, w_in)
    x, z = xz[..., :d_inner], xz[..., d_inner:]
    xpad = jnp.pad(x, ((0, 0), (d_conv - 1, 0), (0, 0)))
    conv = sum(xpad[:, k:k + L, :] * conv_w[:, k][None, None, :] for k in range(d_conv)) + conv_b
    x = jax.nn.silu(conv)
    x_dbl = jnp.einsum("bld,ed->ble", x, x_proj_w)
    dt_low = x_dbl[..., :dt_rank]
    Bm = x_dbl[..., dt_rank:dt_rank + d_state]
    Cm = x_dbl[..., dt_rank + d_state:]
    delta = jax.nn.softplus(jnp.einsum("blr,dr->bld", dt_low, dt_w) + dt_b)
    deltaA = jnp.exp(delta[..., None] * A)
    deltaBu = delta[..., None] * Bm[:, :, None, :] * x[..., None]

    def per_batch(dA, dBu, C):
        def step(s, inp):
            da, dbu, c = inp
            s = da * s + dbu
            return s, jnp.sum(s * c[None, :], axis=-1)
        _, ys = lax.scan(step, jnp.zeros((d_inner, d_state)), (dA, dBu, C))
        return ys
    y = jax.vmap(per_batch)(deltaA, deltaBu, Cm)
    y = y + x * Dp
    y = y * jax.nn.silu(z)
    return jnp.einsum("bld,md->blm", y, out_w)


# ----------------------------- param init ---------------------------------------

def init_params(key, d_model, d_state=16, d_conv=4, expand=2,
                dt_min=0.001, dt_max=0.1, dt_init_floor=1e-4):
    d_inner = int(expand * d_model)
    dt_rank = math.ceil(d_model / 16)
    ks = jax.random.split(key, 7)

    k_in = 1.0 / math.sqrt(d_model)
    in_proj_w = jax.random.uniform(ks[0], (2 * d_inner, d_model), jnp.float32, -k_in, k_in)

    k_conv = 1.0 / math.sqrt(d_conv)
    conv_w = jax.random.uniform(ks[1], (d_inner, d_conv), jnp.float32, -k_conv, k_conv)
    conv_b = jax.random.uniform(ks[2], (d_inner,), jnp.float32, -k_conv, k_conv)

    k_x = 1.0 / math.sqrt(d_inner)
    x_proj_w = jax.random.uniform(ks[3], (dt_rank + 2 * d_state, d_inner), jnp.float32, -k_x, k_x)

    dt_init_std = dt_rank ** -0.5
    dt_proj_w = jax.random.uniform(ks[4], (d_inner, dt_rank), jnp.float32, -dt_init_std, dt_init_std)
    dt = jnp.exp(jax.random.uniform(ks[5], (d_inner,), jnp.float32)
                 * (math.log(dt_max) - math.log(dt_min)) + math.log(dt_min))
    dt = jnp.clip(dt, dt_init_floor, None)
    dt_proj_b = dt + jnp.log(-jnp.expm1(-dt))

    A_log = jnp.log(jnp.tile(jnp.arange(1, d_state + 1, dtype=jnp.float32)[None, :], (d_inner, 1)))
    Dvec = jnp.ones((d_inner,), jnp.float32)

    k_out = 1.0 / math.sqrt(d_inner)
    out_proj_w = jax.random.uniform(ks[6], (d_model, d_inner), jnp.float32, -k_out, k_out)

    return dict(in_proj_w=in_proj_w, conv_w=conv_w, conv_b=conv_b, x_proj_w=x_proj_w,
                dt_proj_w=dt_proj_w, dt_proj_b=dt_proj_b, A_log=A_log, D=Dvec,
                out_proj_w=out_proj_w)


# ----------------------------- main ----------------------------------------------

if __name__ == "__main__":
    d_model, d_state, d_conv, expand = 8, 16, 4, 2
    batch, seqlen = 2, 8

    key = jax.random.PRNGKey(0)
    pkey, xkey, xkey2 = jax.random.split(key, 3)
    params = init_params(pkey, d_model, d_state, d_conv, expand)

    # single-chunk path
    hidden_states = jax.random.normal(xkey, (batch, seqlen, d_model), jnp.float32)
    out = jax.block_until_ready(bimamba_forward(hidden_states, params))
    ref = jax.block_until_ready(bimamba_reference(hidden_states, params))
    assert out.shape == (batch, seqlen, d_model)
    np.testing.assert_allclose(np.asarray(out), np.asarray(ref), rtol=1e-2, atol=1e-2)

    # multi-chunk path (exercises the carried SSM state + conv carry)
    hidden_states2 = jax.random.normal(xkey2, (batch, 32, d_model), jnp.float32)
    out2 = jax.block_until_ready(bimamba_forward(hidden_states2, params, seq_chunk=8))
    ref2 = jax.block_until_ready(bimamba_reference(hidden_states2, params))
    np.testing.assert_allclose(np.asarray(out2), np.asarray(ref2), rtol=1e-2, atol=1e-2)

    print("KERNEL_OK")
</pallas_src>

<mosaic_0001>
module attributes {stable_mosaic.version = 11 : i64} {
  func.func @bimamba_kernel(%arg0: i32, %arg1: i32, %arg2: memref<1x8x8xf32, #tpu.memory_space<vmem>>, %arg3: memref<32x8xf32, #tpu.memory_space<vmem>>, %arg4: memref<4x16xf32, #tpu.memory_space<vmem>>, %arg5: memref<1x16xf32, #tpu.memory_space<vmem>>, %arg6: memref<128x16xf32, #tpu.memory_space<vmem>>, %arg7: memref<16x128xf32, #tpu.memory_space<vmem>>, %arg8: memref<1x16xf32, #tpu.memory_space<vmem>>, %arg9: memref<32x16xf32, #tpu.memory_space<vmem>>, %arg10: memref<16x16xf32, #tpu.memory_space<vmem>>, %arg11: memref<1x16xf32, #tpu.memory_space<vmem>>, %arg12: memref<8x16xf32, #tpu.memory_space<vmem>>, %arg13: memref<1x8x8xf32, #tpu.memory_space<vmem>>, %arg14: memref<11x16xf32, #tpu.memory_space<vmem>>, %arg15: memref<8x16xf32, #tpu.memory_space<vmem>>, %arg16: memref<8x16xf32, #tpu.memory_space<vmem>>, %arg17: memref<32x8xf32, #tpu.memory_space<vmem>>, %arg18: memref<8x16xf32, #tpu.memory_space<vmem>>, %arg19: memref<16x16xf32, #tpu.memory_space<vmem>>) attributes {dimension_semantics = [#tpu.dimension_semantics<parallel>, #tpu.dimension_semantics<arbitrary>], iteration_bounds = array<i64: 2, 1>, scalar_prefetch = 0 : i64, scratch_operands = 6 : i64, tpu.core_type = #tpu.core_type<tc>, window_params = [{transform_indices = @transform_0, window_bounds = array<i64: 1, 8, 8>}, {pipeline_mode = #tpu.pipeline_mode<synchronous>, transform_indices = @transform_1, window_bounds = array<i64: 32, 8>}, {pipeline_mode = #tpu.pipeline_mode<synchronous>, transform_indices = @transform_2, window_bounds = array<i64: 4, 16>}, {pipeline_mode = #tpu.pipeline_mode<synchronous>, transform_indices = @transform_3, window_bounds = array<i64: 1, 16>}, {pipeline_mode = #tpu.pipeline_mode<synchronous>, transform_indices = @transform_4, window_bounds = array<i64: 128, 16>}, {pipeline_mode = #tpu.pipeline_mode<synchronous>, transform_indices = @transform_5, window_bounds = array<i64: 16, 128>}, {pipeline_mode = #tpu.pipeline_mode<synchronous>, transform_indices = @transform_6, window_bounds = array<i64: 1, 16>}, {pipeline_mode = #tpu.pipeline_mode<synchronous>, transform_indices = @transform_7, window_bounds = array<i64: 32, 16>}, {pipeline_mode = #tpu.pipeline_mode<synchronous>, transform_indices = @transform_8, window_bounds = array<i64: 16, 16>}, {pipeline_mode = #tpu.pipeline_mode<synchronous>, transform_indices = @transform_9, window_bounds = array<i64: 1, 16>}, {pipeline_mode = #tpu.pipeline_mode<synchronous>, transform_indices = @transform_10, window_bounds = array<i64: 8, 16>}, {transform_indices = @transform_11, window_bounds = array<i64: 1, 8, 8>}]} {
    %c0_i32 = arith.constant 0 : i32
    %0 = arith.cmpi eq, %arg1, %c0_i32 : i32
    %1 = arith.extui %0 : i1 to i32
    %c0_i32_0 = arith.constant 0 : i32
    %2 = arith.cmpi ne, %1, %c0_i32_0 : i32
    scf.if %2 {
      %cst_122 = arith.constant 0.000000e+00 : f32
      %321 = vector.broadcast %cst_122 : f32 to vector<16x16xf32>
      %c0_123 = arith.constant 0 : index
      %c0_124 = arith.constant 0 : index
      %322 = vector.load %arg19[%c0_123, %c0_124] : memref<16x16xf32, #tpu.memory_space<vmem>>, vector<16x16xf32>
      tpu.vector_store %arg19[%c0_123, %c0_124], %321 {strides = array<i32>} : memref<16x16xf32, #tpu.memory_space<vmem>>, vector<16x16xf32>,
      %cst_125 = arith.constant 0.000000e+00 : f32
      %323 = vector.broadcast %cst_125 : f32 to vector<3x16xf32>
      %c0_126 = arith.constant 0 : index
      %c0_127 = arith.constant 0 : index
      %324 = vector.load %arg14[%c0_126, %c0_127] : memref<11x16xf32, #tpu.memory_space<vmem>>, vector<3x16xf32>
      tpu.vector_store %arg14[%c0_126, %c0_127], %323 {strides = array<i32>} : memref<11x16xf32, #tpu.memory_space<vmem>>, vector<3x16xf32>,
    } else {
    }
    %c0_i32_1 = arith.constant 0 : i32
    %3 = arith.cmpi ne, %arg1, %c0_i32_1 : i32
    %4 = arith.extui %3 : i1 to i32
    %c0_i32_2 = arith.constant 0 : i32
    %5 = arith.cmpi ne, %4, %c0_i32_2 : i32
    scf.if %5 {
      %c8 = arith.constant 8 : index
      %c0_122 = arith.constant 0 : index
      %321 = vector.load %arg14[%c8, %c0_122] : memref<11x16xf32, #tpu.memory_space<vmem>>, vector<3x16xf32>
      %c0_123 = arith.constant 0 : index
      %c0_124 = arith.constant 0 : index
      %322 = vector.load %arg14[%c0_123, %c0_124] : memref<11x16xf32, #tpu.memory_space<vmem>>, vector<3x16xf32>
      tpu.vector_store %arg14[%c0_123, %c0_124], %321 {strides = array<i32>} : memref<11x16xf32, #tpu.memory_space<vmem>>, vector<3x16xf32>,
    } else {
    }
    %c0 = arith.constant 0 : index
    %c0_3 = arith.constant 0 : index
    %c0_4 = arith.constant 0 : index
    %6 = vector.load %arg2[%c0, %c0_3, %c0_4] : memref<1x8x8xf32, #tpu.memory_space<vmem>>, vector<1x8x8xf32>
    %7 = vector.shape_cast %6 : vector<1x8x8xf32> to vector<8x8xf32>
    %c0_5 = arith.constant 0 : index
    %c0_6 = arith.constant 0 : index
    %8 = vector.load %arg3[%c0_5, %c0_6] : memref<32x8xf32, #tpu.memory_space<vmem>>, vector<32x8xf32>
    %cst = arith.constant dense<0.000000e+00> : vector<8x32xf32>
    %9 = tpu.matmul %7, %8, %cst {dimension_numbers = #tpu.dot_dimension_numbers<[1], [1], [0], [0], [0, 0, 1, 0], [], []>} : vector<8x8xf32>, vector<32x8xf32>, vector<8x32xf32> -> vector<8x32xf32>
    %10 = vector.extract_strided_slice %9 {offsets = [0, 0], sizes = [8, 16], strides = [1, 1]} : vector<8x32xf32> to vector<8x16xf32>
    %11 = vector.extract_strided_slice %9 {offsets = [0, 16], sizes = [8, 16], strides = [1, 1]} : vector<8x32xf32> to vector<8x16xf32>
    %c3 = arith.constant 3 : index
    %c0_7 = arith.constant 0 : index
    %12 = vector.load %arg14[%c3, %c0_7] : memref<11x16xf32, #tpu.memory_space<vmem>>, vector<8x16xf32>
    tpu.vector_store %arg14[%c3, %c0_7], %10 {strides = array<i32>} : memref<11x16xf32, #tpu.memory_space<vmem>>, vector<8x16xf32>,
    %cst_8 = arith.constant 0.000000e+00 : f32
    %13 = vector.broadcast %cst_8 : f32 to vector<8x16xf32>
    %c0_9 = arith.constant 0 : index
    %c0_10 = arith.constant 0 : index
    %14 = vector.load %arg14[%c0_9, %c0_10] : memref<11x16xf32, #tpu.memory_space<vmem>>, vector<8x16xf32>
    %c0_11 = arith.constant 0 : index
    %c0_12 = arith.constant 0 : index
    %15 = vector.load %arg4[%c0_11, %c0_12] : memref<4x16xf32, #tpu.memory_space<vmem>>, vector<1x16xf32>
    %16 = vector.broadcast %15 : vector<1x16xf32> to vector<8x16xf32>
    %17 = arith.mulf %14, %16 : vector<8x16xf32>
    %18 = arith.addf %13, %17 : vector<8x16xf32>
    %c1 = arith.constant 1 : index
    %c0_13 = arith.constant 0 : index
    %19 = vector.load %arg14[%c1, %c0_13] : memref<11x16xf32, #tpu.memory_space<vmem>>, vector<8x16xf32>
    %c1_14 = arith.constant 1 : index
    %c0_15 = arith.constant 0 : index
    %20 = vector.load %arg4[%c1_14, %c0_15] : memref<4x16xf32, #tpu.memory_space<vmem>>, vector<1x16xf32>
    %21 = vector.broadcast %20 : vector<1x16xf32> to vector<8x16xf32>
    %22 = arith.mulf %19, %21 : vector<8x16xf32>
    %23 = arith.addf %18, %22 : vector<8x16xf32>
    %c2 = arith.constant 2 : index
    %c0_16 = arith.constant 0 : index
    %24 = vector.load %arg14[%c2, %c0_16] : memref<11x16xf32, #tpu.memory_space<vmem>>, vector<8x16xf32>
    %c2_17 = arith.constant 2 : index
    %c0_18 = arith.constant 0 : index
    %25 = vector.load %arg4[%c2_17, %c0_18] : memref<4x16xf32, #tpu.memory_space<vmem>>, vector<1x16xf32>
    %26 = vector.broadcast %25 : vector<1x16xf32> to vector<8x16xf32>
    %27 = arith.mulf %24, %26 : vector<8x16xf32>
    %28 = arith.addf %23, %27 : vector<8x16xf32>
    %c3_19 = arith.constant 3 : index
    %c0_20 = arith.constant 0 : index
    %29 = vector.load %arg14[%c3_19, %c0_20] : memref<11x16xf32, #tpu.memory_space<vmem>>, vector<8x16xf32>
    %c3_21 = arith.constant 3 : index
    %c0_22 = arith.constant 0 : index
    %30 = vector.load %arg4[%c3_21, %c0_22] : memref<4x16xf32, #tpu.memory_space<vmem>>, vector<1x16xf32>
    %31 = vector.broadcast %30 : vector<1x16xf32> to vector<8x16xf32>
    %32 = arith.mulf %29, %31 : vector<8x16xf32>
    %33 = arith.addf %28, %32 : vector<8x16xf32>
    %c0_23 = arith.constant 0 : index
    %c0_24 = arith.constant 0 : index
    %34 = vector.load %arg5[%c0_23, %c0_24] : memref<1x16xf32, #tpu.memory_space<vmem>>, vector<1x16xf32>
    %35 = vector.broadcast %34 : vector<1x16xf32> to vector<8x16xf32>
    %36 = arith.addf %33, %35 : vector<8x16xf32>
    %cst_25 = arith.constant 0.000000e+00 : f32
    %37 = vector.broadcast %cst_25 : f32 to vector<8x16xf32>
    %38 = arith.subf %37, %36 : vector<8x16xf32>
    %39 = math.exp %38 : vector<8x16xf32>
    %cst_26 = arith.constant 1.000000e+00 : f32
    %40 = vector.broadcast %cst_26 : f32 to vector<8x16xf32>
    %41 = arith.addf %40, %39 : vector<8x16xf32>
    %42 = tpu.reciprocal %41 {approx = true} : vector<8x16xf32> -> vector<8x16xf32>
    %43 = arith.mulf %36, %42 : vector<8x16xf32>
    %c0_27 = arith.constant 0 : index
    %c0_28 = arith.constant 0 : index
    %44 = vector.load %arg6[%c0_27, %c0_28] : memref<128x16xf32, #tpu.memory_space<vmem>>, vector<128x16xf32>
    %cst_29 = arith.constant dense<0.000000e+00> : vector<8x128xf32>
    %45 = tpu.matmul %43, %44, %cst_29 {dimension_numbers = #tpu.dot_dimension_numbers<[1], [1], [0], [0], [0, 0, 1, 0], [], []>} : vector<8x16xf32>, vector<128x16xf32>, vector<8x128xf32> -> vector<8x128xf32>
    %c0_30 = arith.constant 0 : index
    %c0_31 = arith.constant 0 : index
    %46 = vector.load %arg7[%c0_30, %c0_31] : memref<16x128xf32, #tpu.memory_space<vmem>>, vector<16x128xf32>
    %cst_32 = arith.constant dense<0.000000e+00> : vector<8x16xf32>
    %47 = tpu.matmul %45, %46, %cst_32 {dimension_numbers = #tpu.dot_dimension_numbers<[1], [1], [0], [0], [0, 0, 1, 0], [], []>} : vector<8x128xf32>, vector<16x128xf32>, vector<8x16xf32> -> vector<8x16xf32>
    %c0_33 = arith.constant 0 : index
    %c0_34 = arith.constant 0 : index
    %48 = vector.load %arg8[%c0_33, %c0_34] : memref<1x16xf32, #tpu.memory_space<vmem>>, vector<1x16xf32>
    %49 = vector.broadcast %48 : vector<1x16xf32> to vector<8x16xf32>
    %50 = arith.addf %47, %49 : vector<8x16xf32>
    %cst_35 = arith.constant 0.000000e+00 : f32
    %51 = vector.broadcast %cst_35 : f32 to vector<8x16xf32>
    %52 = arith.maximumf %50, %51 : vector<8x16xf32>
    %53 = math.absf %50 : vector<8x16xf32>
    %cst_36 = arith.constant 0.000000e+00 : f32
    %54 = vector.broadcast %cst_36 : f32 to vector<8x16xf32>
    %55 = arith.subf %54, %53 : vector<8x16xf32>
    %56 = math.exp %55 : vector<8x16xf32>
    %cst_37 = arith.constant 1.000000e+00 : f32
    %57 = vector.broadcast %cst_37 : f32 to vector<8x16xf32>
    %58 = arith.addf %57, %56 : vector<8x16xf32>
    %59 = math.log %58 : vector<8x16xf32>
    %60 = arith.addf %52, %59 : vector<8x16xf32>
    %c0_38 = arith.constant 0 : index
    %c0_39 = arith.constant 0 : index
    %61 = vector.load %arg9[%c0_38, %c0_39] : memref<32x16xf32, #tpu.memory_space<vmem>>, vector<32x16xf32>
    %cst_40 = arith.constant dense<0.000000e+00> : vector<32x8xf32>
    %62 = tpu.matmul %61, %43, %cst_40 {dimension_numbers = #tpu.dot_dimension_numbers<[1], [1], [0], [0], [0, 0, 1, 0], [], []>} : vector<32x16xf32>, vector<8x16xf32>, vector<32x8xf32> -> vector<32x8xf32>
    %c0_41 = arith.constant 0 : index
    %c0_42 = arith.constant 0 : index
    %63 = vector.load %arg17[%c0_41, %c0_42] : memref<32x8xf32, #tpu.memory_space<vmem>>, vector<32x8xf32>
    tpu.vector_store %arg17[%c0_41, %c0_42], %62 {strides = array<i32>} : memref<32x8xf32, #tpu.memory_space<vmem>>, vector<32x8xf32>,
    %c0_43 = arith.constant 0 : index
    %c0_44 = arith.constant 0 : index
    %64 = vector.load %arg15[%c0_43, %c0_44] : memref<8x16xf32, #tpu.memory_space<vmem>>, vector<8x16xf32>
    tpu.vector_store %arg15[%c0_43, %c0_44], %60 {strides = array<i32>} : memref<8x16xf32, #tpu.memory_space<vmem>>, vector<8x16xf32>,
    %65 = arith.mulf %60, %43 : vector<8x16xf32>
    %c0_45 = arith.constant 0 : index
    %c0_46 = arith.constant 0 : index
    %66 = vector.load %arg16[%c0_45, %c0_46] : memref<8x16xf32, #tpu.memory_space<vmem>>, vector<8x16xf32>
    tpu.vector_store %arg16[%c0_45, %c0_46], %65 {strides = array<i32>} : memref<8x16xf32, #tpu.memory_space<vmem>>, vector<8x16xf32>,
    %c0_47 = arith.constant 0 : index
    %c0_48 = arith.constant 0 : index
    %67 = vector.load %arg10[%c0_47, %c0_48] : memref<16x16xf32, #tpu.memory_space<vmem>>, vector<16x16xf32>
    %68 = tpu.iota {dimensions = array<i32: 1>} : vector<1x8xi32>
    %c0_49 = arith.constant 0 : index
    %c0_50 = arith.constant 0 : index
    %69 = vector.load %arg19[%c0_49, %c0_50] : memref<16x16xf32, #tpu.memory_space<vmem>>, vector<16x16xf32>
    %c0_i32_51 = arith.constant 0 : i32
    %70 = vector.broadcast %c0_i32_51 : i32 to vector<1x8xi32>
    %71 = arith.cmpi eq, %68, %70 : vector<1x8xi32>
    %72 = arith.extui %71 : vector<1x8xi1> to vector<1x8xi32>
    %73 = arith.sitofp %72 : vector<1x8xi32> to vector<1x8xf32>
    %c0_52 = arith.constant 0 : index
    %c0_53 = arith.constant 0 : index
    %74 = vector.load %arg17[%c0_52, %c0_53] : memref<32x8xf32, #tpu.memory_space<vmem>>, vector<32x8xf32>
    %75 = vector.broadcast %73 : vector<1x8xf32> to vector<32x8xf32>
    %76 = arith.mulf %74, %75 : vector<32x8xf32>
    %cst_54 = arith.constant dense<0.000000e+00> : vector<32xf32>
    %77 = vector.multi_reduction <add>, %76, %cst_54 [1] : vector<32x8xf32> to vector<32xf32>
    %78 = vector.shape_cast %77 : vector<32xf32> to vector<32x1xf32>
    %79 = vector.extract_strided_slice %78 {offsets = [0, 0], sizes = [16, 1], strides = [1, 1]} : vector<32x1xf32> to vector<16x1xf32>
    %80 = vector.extract_strided_slice %78 {offsets = [16, 0], sizes = [16, 1], strides = [1, 1]} : vector<32x1xf32> to vector<16x1xf32>
    %81 = arith.index_cast %c0_i32_51 : i32 to index
    %c0_55 = arith.constant 0 : index
    %82 = vector.load %arg15[%81, %c0_55] : memref<8x16xf32, #tpu.memory_space<vmem>>, vector<1x16xf32>
    %83 = arith.index_cast %c0_i32_51 : i32 to index
    %c0_56 = arith.constant 0 : index
    %84 = vector.load %arg16[%83, %c0_56] : memref<8x16xf32, #tpu.memory_space<vmem>>, vector<1x16xf32>
    %85 = vector.broadcast %82 : vector<1x16xf32> to vector<16x16xf32>
    %86 = arith.mulf %85, %67 : vector<16x16xf32>
    %87 = math.exp %86 : vector<16x16xf32>
    %88 = arith.mulf %87, %69 : vector<16x16xf32>
    %89 = vector.broadcast %79 : vector<16x1xf32> to vector<16x16xf32>
    %90 = vector.broadcast %84 : vector<1x16xf32> to vector<16x16xf32>
    %91 = arith.mulf %89, %90 : vector<16x16xf32>
    %92 = arith.addf %88, %91 : vector<16x16xf32>
    %93 = vector.broadcast %80 : vector<16x1xf32> to vector<16x16xf32>
    %94 = arith.mulf %92, %93 : vector<16x16xf32>
    %cst_57 = arith.constant dense<0.000000e+00> : vector<16xf32>
    %95 = vector.multi_reduction <add>, %94, %cst_57 [0] : vector<16x16xf32> to vector<16xf32>
    %96 = vector.shape_cast %95 : vector<16xf32> to vector<1x16xf32>
    %97 = arith.index_cast %c0_i32_51 : i32 to index
    %c0_58 = arith.constant 0 : index
    %98 = vector.load %arg18[%97, %c0_58] : memref<8x16xf32, #tpu.memory_space<vmem>>, vector<1x16xf32>
    tpu.vector_store %arg18[%97, %c0_58], %96 {strides = array<i32>} : memref<8x16xf32, #tpu.memory_space<vmem>>, vector<1x16xf32>,
    %c1_i32 = arith.constant 1 : i32
    %99 = vector.broadcast %c1_i32 : i32 to vector<1x8xi32>
    %100 = arith.cmpi eq, %68, %99 : vector<1x8xi32>
    %101 = arith.extui %100 : vector<1x8xi1> to vector<1x8xi32>
    %102 = arith.sitofp %101 : vector<1x8xi32> to vector<1x8xf32>
    %c0_59 = arith.constant 0 : index
    %c0_60 = arith.constant 0 : index
    %103 = vector.load %arg17[%c0_59, %c0_60] : memref<32x8xf32, #tpu.memory_space<vmem>>, vector<32x8xf32>
    %104 = vector.broadcast %102 : vector<1x8xf32> to vector<32x8xf32>
    %105 = arith.mulf %103, %104 : vector<32x8xf32>
    %cst_61 = arith.constant dense<0.000000e+00> : vector<32xf32>
    %106 = vector.multi_reduction <add>, %105, %cst_61 [1] : vector<32x8xf32> to vector<32xf32>
    %107 = vector.shape_cast %106 : vector<32xf32> to vector<32x1xf32>
    %108 = vector.extract_strided_slice %107 {offsets = [0, 0], sizes = [16, 1], strides = [1, 1]} : vector<32x1xf32> to vector<16x1xf32>
    %109 = vector.extract_strided_slice %107 {offsets = [16, 0], sizes = [16, 1], strides = [1, 1]} : vector<32x1xf32> to vector<16x1xf32>
    %110 = arith.index_cast %c1_i32 : i32 to index
    %c0_62 = arith.constant 0 : index
    %111 = vector.load %arg15[%110, %c0_62] : memref<8x16xf32, #tpu.memory_space<vmem>>, vector<1x16xf32>
    %112 = arith.index_cast %c1_i32 : i32 to index
    %c0_63 = arith.constant 0 : index
    %113 = vector.load %arg16[%112, %c0_63] : memref<8x16xf32, #tpu.memory_space<vmem>>, vector<1x16xf32>
    %114 = vector.broadcast %111 : vector<1x16xf32> to vector<16x16xf32>
    %115 = arith.mulf %114, %67 : vector<16x16xf32>
    %116 = math.exp %115 : vector<16x16xf32>
    %117 = arith.mulf %116, %92 : vector<16x16xf32>
    %118 = vector.broadcast %108 : vector<16x1xf32> to vector<16x16xf32>
    %119 = vector.broadcast %113 : vector<1x16xf32> to vector<16x16xf32>
    %120 = arith.mulf %118, %119 : vector<16x16xf32>
    %121 = arith.addf %117, %120 : vector<16x16xf32>
    %122 = vector.broadcast %109 : vector<16x1xf32> to vector<16x16xf32>
    %123 = arith.mulf %121, %122 : vector<16x16xf32>
    %cst_64 = arith.constant dense<0.000000e+00> : vector<16xf32>
    %124 = vector.multi_reduction <add>, %123, %cst_64 [0] : vector<16x16xf32> to vector<16xf32>
    %125 = vector.shape_cast %124 : vector<16xf32> to vector<1x16xf32>
    %126 = arith.index_cast %c1_i32 : i32 to index
    %c0_65 = arith.constant 0 : index
    %127 = vector.load %arg18[%126, %c0_65] : memref<8x16xf32, #tpu.memory_space<vmem>>, vector<1x16xf32>
    tpu.vector_store %arg18[%126, %c0_65], %125 {strides = array<i32>} : memref<8x16xf32, #tpu.memory_space<vmem>>, vector<1x16xf32>,
    %c2_i32 = arith.constant 2 : i32
    %128 = vector.broadcast %c2_i32 : i32 to vector<1x8xi32>
    %129 = arith.cmpi eq, %68, %128 : vector<1x8xi32>
    %130 = arith.extui %129 : vector<1x8xi1> to vector<1x8xi32>
    %131 = arith.sitofp %130 : vector<1x8xi32> to vector<1x8xf32>
    %c0_66 = arith.constant 0 : index
    %c0_67 = arith.constant 0 : index
    %132 = vector.load %arg17[%c0_66, %c0_67] : memref<32x8xf32, #tpu.memory_space<vmem>>, vector<32x8xf32>
    %133 = vector.broadcast %131 : vector<1x8xf32> to vector<32x8xf32>
    %134 = arith.mulf %132, %133 : vector<32x8xf32>
    %cst_68 = arith.constant dense<0.000000e+00> : vector<32xf32>
    %135 = vector.multi_reduction <add>, %134, %cst_68 [1] : vector<32x8xf32> to vector<32xf32>
    %136 = vector.shape_cast %135 : vector<32xf32> to vector<32x1xf32>
    %137 = vector.extract_strided_slice %136 {offsets = [0, 0], sizes = [16, 1], strides = [1, 1]} : vector<32x1xf32> to vector<16x1xf32>
    %138 = vector.extract_strided_slice %136 {offsets = [16, 0], sizes = [16, 1], strides = [1, 1]} : vector<32x1xf32> to vector<16x1xf32>
    %139 = arith.index_cast %c2_i32 : i32 to index
    %c0_69 = arith.constant 0 : index
    %140 = vector.load %arg15[%139, %c0_69] : memref<8x16xf32, #tpu.memory_space<vmem>>, vector<1x16xf32>
    %141 = arith.index_cast %c2_i32 : i32 to index
    %c0_70 = arith.constant 0 : index
    %142 = vector.load %arg16[%141, %c0_70] : memref<8x16xf32, #tpu.memory_space<vmem>>, vector<1x16xf32>
    %143 = vector.broadcast %140 : vector<1x16xf32> to vector<16x16xf32>
    %144 = arith.mulf %143, %67 : vector<16x16xf32>
    %145 = math.exp %144 : vector<16x16xf32>
    %146 = arith.mulf %145, %121 : vector<16x16xf32>
    %147 = vector.broadcast %137 : vector<16x1xf32> to vector<16x16xf32>
    %148 = vector.broadcast %142 : vector<1x16xf32> to vector<16x16xf32>
    %149 = arith.mulf %147, %148 : vector<16x16xf32>
    %150 = arith.addf %146, %149 : vector<16x16xf32>
    %151 = vector.broadcast %138 : vector<16x1xf32> to vector<16x16xf32>
    %152 = arith.mulf %150, %151 : vector<16x16xf32>
    %cst_71 = arith.constant dense<0.000000e+00> : vector<16xf32>
    %153 = vector.multi_reduction <add>, %152, %cst_71 [0] : vector<16x16xf32> to vector<16xf32>
    %154 = vector.shape_cast %153 : vector<16xf32> to vector<1x16xf32>
    %155 = arith.index_cast %c2_i32 : i32 to index
    %c0_72 = arith.constant 0 : index
    %156 = vector.load %arg18[%155, %c0_72] : memref<8x16xf32, #tpu.memory_space<vmem>>, vector<1x16xf32>
    tpu.vector_store %arg18[%155, %c0_72], %154 {strides = array<i32>} : memref<8x16xf32, #tpu.memory_space<vmem>>, vector<1x16xf32>,
    %c3_i32 = arith.constant 3 : i32
    %157 = vector.broadcast %c3_i32 : i32 to vector<1x8xi32>
    %158 = arith.cmpi eq, %68, %157 : vector<1x8xi32>
    %159 = arith.extui %158 : vector<1x8xi1> to vector<1x8xi32>
    %160 = arith.sitofp %159 : vector<1x8xi32> to vector<1x8xf32>
    %c0_73 = arith.constant 0 : index
    %c0_74 = arith.constant 0 : index
    %161 = vector.load %arg17[%c0_73, %c0_74] : memref<32x8xf32, #tpu.memory_space<vmem>>, vector<32x8xf32>
    %162 = vector.broadcast %160 : vector<1x8xf32> to vector<32x8xf32>
    %163 = arith.mulf %161, %162 : vector<32x8xf32>
    %cst_75 = arith.constant dense<0.000000e+00> : vector<32xf32>
    %164 = vector.multi_reduction <add>, %163, %cst_75 [1] : vector<32x8xf32> to vector<32xf32>
    %165 = vector.shape_cast %164 : vector<32xf32> to vector<32x1xf32>
    %166 = vector.extract_strided_slice %165 {offsets = [0, 0], sizes = [16, 1], strides = [1, 1]} : vector<32x1xf32> to vector<16x1xf32>
    %167 = vector.extract_strided_slice %165 {offsets = [16, 0], sizes = [16, 1], strides = [1, 1]} : vector<32x1xf32> to vector<16x1xf32>
    %168 = arith.index_cast %c3_i32 : i32 to index
    %c0_76 = arith.constant 0 : index
    %169 = vector.load %arg15[%168, %c0_76] : memref<8x16xf32, #tpu.memory_space<vmem>>, vector<1x16xf32>
    %170 = arith.index_cast %c3_i32 : i32 to index
    %c0_77 = arith.constant 0 : index
    %171 = vector.load %arg16[%170, %c0_77] : memref<8x16xf32, #tpu.memory_space<vmem>>, vector<1x16xf32>
    %172 = vector.broadcast %169 : vector<1x16xf32> to vector<16x16xf32>
    %173 = arith.mulf %172, %67 : vector<16x16xf32>
    %174 = math.exp %173 : vector<16x16xf32>
    %175 = arith.mulf %174, %150 : vector<16x16xf32>
    %176 = vector.broadcast %166 : vector<16x1xf32> to vector<16x16xf32>
    %177 = vector.broadcast %171 : vector<1x16xf32> to vector<16x16xf32>
    %178 = arith.mulf %176, %177 : vector<16x16xf32>
    %179 = arith.addf %175, %178 : vector<16x16xf32>
    %180 = vector.broadcast %167 : vector<16x1xf32> to vector<16x16xf32>
    %181 = arith.mulf %179, %180 : vector<16x16xf32>
    %cst_78 = arith.constant dense<0.000000e+00> : vector<16xf32>
    %182 = vector.multi_reduction <add>, %181, %cst_78 [0] : vector<16x16xf32> to vector<16xf32>
    %183 = vector.shape_cast %182 : vector<16xf32> to vector<1x16xf32>
    %184 = arith.index_cast %c3_i32 : i32 to index
    %c0_79 = arith.constant 0 : index
    %185 = vector.load %arg18[%184, %c0_79] : memref<8x16xf32, #tpu.memory_space<vmem>>, vector<1x16xf32>
    tpu.vector_store %arg18[%184, %c0_79], %183 {strides = array<i32>} : memref<8x16xf32, #tpu.memory_space<vmem>>, vector<1x16xf32>,
    %c4_i32 = arith.constant 4 : i32
    %186 = vector.broadcast %c4_i32 : i32 to vector<1x8xi32>
    %187 = arith.cmpi eq, %68, %186 : vector<1x8xi32>
    %188 = arith.extui %187 : vector<1x8xi1> to vector<1x8xi32>
    %189 = arith.sitofp %188 : vector<1x8xi32> to vector<1x8xf32>
    %c0_80 = arith.constant 0 : index
    %c0_81 = arith.constant 0 : index
    %190 = vector.load %arg17[%c0_80, %c0_81] : memref<32x8xf32, #tpu.memory_space<vmem>>, vector<32x8xf32>
    %191 = vector.broadcast %189 : vector<1x8xf32> to vector<32x8xf32>
    %192 = arith.mulf %190, %191 : vector<32x8xf32>
    %cst_82 = arith.constant dense<0.000000e+00> : vector<32xf32>
    %193 = vector.multi_reduction <add>, %192, %cst_82 [1] : vector<32x8xf32> to vector<32xf32>
    %194 = vector.shape_cast %193 : vector<32xf32> to vector<32x1xf32>
    %195 = vector.extract_strided_slice %194 {offsets = [0, 0], sizes = [16, 1], strides = [1, 1]} : vector<32x1xf32> to vector<16x1xf32>
    %196 = vector.extract_strided_slice %194 {offsets = [16, 0], sizes = [16, 1], strides = [1, 1]} : vector<32x1xf32> to vector<16x1xf32>
    %197 = arith.index_cast %c4_i32 : i32 to index
    %c0_83 = arith.constant 0 : index
    %198 = vector.load %arg15[%197, %c0_83] : memref<8x16xf32, #tpu.memory_space<vmem>>, vector<1x16xf32>
    %199 = arith.index_cast %c4_i32 : i32 to index
    %c0_84 = arith.constant 0 : index
    %200 = vector.load %arg16[%199, %c0_84] : memref<8x16xf32, #tpu.memory_space<vmem>>, vector<1x16xf32>
    %201 = vector.broadcast %198 : vector<1x16xf32> to vector<16x16xf32>
    %202 = arith.mulf %201, %67 : vector<16x16xf32>
    %203 = math.exp %202 : vector<16x16xf32>
    %204 = arith.mulf %203, %179 : vector<16x16xf32>
    %205 = vector.broadcast %195 : vector<16x1xf32> to vector<16x16xf32>
    %206 = vector.broadcast %200 : vector<1x16xf32> to vector<16x16xf32>
    %207 = arith.mulf %205, %206 : vector<16x16xf32>
    %208 = arith.addf %204, %207 : vector<16x16xf32>
    %209 = vector.broadcast %196 : vector<16x1xf32> to vector<16x16xf32>
    %210 = arith.mulf %208, %209 : vector<16x16xf32>
    %cst_85 = arith.constant dense<0.000000e+00> : vector<16xf32>
    %211 = vector.multi_reduction <add>, %210, %cst_85 [0] : vector<16x16xf32> to vector<16xf32>
    %212 = vector.shape_cast %211 : vector<16xf32> to vector<1x16xf32>
    %213 = arith.index_cast %c4_i32 : i32 to index
    %c0_86 = arith.constant 0 : index
    %214 = vector.load %arg18[%213, %c0_86] : memref<8x16xf32, #tpu.memory_space<vmem>>, vector<1x16xf32>
    tpu.vector_store %arg18[%213, %c0_86], %212 {strides = array<i32>} : memref<8x16xf32, #tpu.memory_space<vmem>>, vector<1x16xf32>,
    %c5_i32 = arith.constant 5 : i32
    %215 = vector.broadcast %c5_i32 : i32 to vector<1x8xi32>
    %216 = arith.cmpi eq, %68, %215 : vector<1x8xi32>
    %217 = arith.extui %216 : vector<1x8xi1> to vector<1x8xi32>
    %218 = arith.sitofp %217 : vector<1x8xi32> to vector<1x8xf32>
    %c0_87 = arith.constant 0 : index
    %c0_88 = arith.constant 0 : index
    %219 = vector.load %arg17[%c0_87, %c0_88] : memref<32x8xf32, #tpu.memory_space<vmem>>, vector<32x8xf32>
    %220 = vector.broadcast %218 : vector<1x8xf32> to vector<32x8xf32>
    %221 = arith.mulf %219, %220 : vector<32x8xf32>
    %cst_89 = arith.constant dense<0.000000e+00> : vector<32xf32>
    %222 = vector.multi_reduction <add>, %221, %cst_89 [1] : vector<32x8xf32> to vector<32xf32>
    %223 = vector.shape_cast %222 : vector<32xf32> to vector<32x1xf32>
    %224 = vector.extract_strided_slice %223 {offsets = [0, 0], sizes = [16, 1], strides = [1, 1]} : vector<32x1xf32> to vector<16x1xf32>
    %225 = vector.extract_strided_slice %223 {offsets = [16, 0], sizes = [16, 1], strides = [1, 1]} : vector<32x1xf32> to vector<16x1xf32>
    %226 = arith.index_cast %c5_i32 : i32 to index
    %c0_90 = arith.constant 0 : index
    %227 = vector.load %arg15[%226, %c0_90] : memref<8x16xf32, #tpu.memory_space<vmem>>, vector<1x16xf32>
    %228 = arith.index_cast %c5_i32 : i32 to index
    %c0_91 = arith.constant 0 : index
    %229 = vector.load %arg16[%228, %c0_91] : memref<8x16xf32, #tpu.memory_space<vmem>>, vector<1x16xf32>
    %230 = vector.broadcast %227 : vector<1x16xf32> to vector<16x16xf32>
    %231 = arith.mulf %230, %67 : vector<16x16xf32>
    %232 = math.exp %231 : vector<16x16xf32>
    %233 = arith.mulf %232, %208 : vector<16x16xf32>
    %234 = vector.broadcast %224 : vector<16x1xf32> to vector<16x16xf32>
    %235 = vector.broadcast %229 : vector<1x16xf32> to vector<16x16xf32>
    %236 = arith.mulf %234, %235 : vector<16x16xf32>
    %237 = arith.addf %233, %236 : vector<16x16xf32>
    %238 = vector.broadcast %225 : vector<16x1xf32> to vector<16x16xf32>
    %239 = arith.mulf %237, %238 : vector<16x16xf32>
    %cst_92 = arith.constant dense<0.000000e+00> : vector<16xf32>
    %240 = vector.multi_reduction <add>, %239, %cst_92 [0] : vector<16x16xf32> to vector<16xf32>
    %241 = vector.shape_cast %240 : vector<16xf32> to vector<1x16xf32>
    %242 = arith.index_cast %c5_i32 : i32 to index
    %c0_93 = arith.constant 0 : index
    %243 = vector.load %arg18[%242, %c0_93] : memref<8x16xf32, #tpu.memory_space<vmem>>, vector<1x16xf32>
    tpu.vector_store %arg18[%242, %c0_93], %241 {strides = array<i32>} : memref<8x16xf32, #tpu.memory_space<vmem>>, vector<1x16xf32>,
    %c6_i32 = arith.constant 6 : i32
    %244 = vector.broadcast %c6_i32 : i32 to vector<1x8xi32>
    %245 = arith.cmpi eq, %68, %244 : vector<1x8xi32>
    %246 = arith.extui %245 : vector<1x8xi1> to vector<1x8xi32>
    %247 = arith.sitofp %246 : vector<1x8xi32> to vector<1x8xf32>
    %c0_94 = arith.constant 0 : index
    %c0_95 = arith.constant 0 : index
    %248 = vector.load %arg17[%c0_94, %c0_95] : memref<32x8xf32, #tpu.memory_space<vmem>>, vector<32x8xf32>
    %249 = vector.broadcast %247 : vector<1x8xf32> to vector<32x8xf32>
    %250 = arith.mulf %248, %249 : vector<32x8xf32>
    %cst_96 = arith.constant dense<0.000000e+00> : vector<32xf32>
    %251 = vector.multi_reduction <add>, %250, %cst_96 [1] : vector<32x8xf32> to vector<32xf32>
    %252 = vector.shape_cast %251 : vector<32xf32> to vector<32x1xf32>
    %253 = vector.extract_strided_slice %252 {offsets = [0, 0], sizes = [16, 1], strides = [1, 1]} : vector<32x1xf32> to vector<16x1xf32>
    %254 = vector.extract_strided_slice %252 {offsets = [16, 0], sizes = [16, 1], strides = [1, 1]} : vector<32x1xf32> to vector<16x1xf32>
    %255 = arith.index_cast %c6_i32 : i32 to index
    %c0_97 = arith.constant 0 : index
    %256 = vector.load %arg15[%255, %c0_97] : memref<8x16xf32, #tpu.memory_space<vmem>>, vector<1x16xf32>
    %257 = arith.index_cast %c6_i32 : i32 to index
    %c0_98 = arith.constant 0 : index
    %258 = vector.load %arg16[%257, %c0_98] : memref<8x16xf32, #tpu.memory_space<vmem>>, vector<1x16xf32>
    %259 = vector.broadcast %256 : vector<1x16xf32> to vector<16x16xf32>
    %260 = arith.mulf %259, %67 : vector<16x16xf32>
    %261 = math.exp %260 : vector<16x16xf32>
    %262 = arith.mulf %261, %237 : vector<16x16xf32>
    %263 = vector.broadcast %253 : vector<16x1xf32> to vector<16x16xf32>
    %264 = vector.broadcast %258 : vector<1x16xf32> to vector<16x16xf32>
    %265 = arith.mulf %263, %264 : vector<16x16xf32>
    %266 = arith.addf %262, %265 : vector<16x16xf32>
    %267 = vector.broadcast %254 : vector<16x1xf32> to vector<16x16xf32>
    %268 = arith.mulf %266, %267 : vector<16x16xf32>
    %cst_99 = arith.constant dense<0.000000e+00> : vector<16xf32>
    %269 = vector.multi_reduction <add>, %268, %cst_99 [0] : vector<16x16xf32> to vector<16xf32>
    %270 = vector.shape_cast %269 : vector<16xf32> to vector<1x16xf32>
    %271 = arith.index_cast %c6_i32 : i32 to index
    %c0_100 = arith.constant 0 : index
    %272 = vector.load %arg18[%271, %c0_100] : memref<8x16xf32, #tpu.memory_space<vmem>>, vector<1x16xf32>
    tpu.vector_store %arg18[%271, %c0_100], %270 {strides = array<i32>} : memref<8x16xf32, #tpu.memory_space<vmem>>, vector<1x16xf32>,
    %c7_i32 = arith.constant 7 : i32
    %273 = vector.broadcast %c7_i32 : i32 to vector<1x8xi32>
    %274 = arith.cmpi eq, %68, %273 : vector<1x8xi32>
    %275 = arith.extui %274 : vector<1x8xi1> to vector<1x8xi32>
    %276 = arith.sitofp %275 : vector<1x8xi32> to vector<1x8xf32>
    %c0_101 = arith.constant 0 : index
    %c0_102 = arith.constant 0 : index
    %277 = vector.load %arg17[%c0_101, %c0_102] : memref<32x8xf32, #tpu.memory_space<vmem>>, vector<32x8xf32>
    %278 = vector.broadcast %276 : vector<1x8xf32> to vector<32x8xf32>
    %279 = arith.mulf %277, %278 : vector<32x8xf32>
    %cst_103 = arith.constant dense<0.000000e+00> : vector<32xf32>
    %280 = vector.multi_reduction <add>, %279, %cst_103 [1] : vector<32x8xf32> to vector<32xf32>
    %281 = vector.shape_cast %280 : vector<32xf32> to vector<32x1xf32>
    %282 = vector.extract_strided_slice %281 {offsets = [0, 0], sizes = [16, 1], strides = [1, 1]} : vector<32x1xf32> to vector<16x1xf32>
    %283 = vector.extract_strided_slice %281 {offsets = [16, 0], sizes = [16, 1], strides = [1, 1]} : vector<32x1xf32> to vector<16x1xf32>
    %284 = arith.index_cast %c7_i32 : i32 to index
    %c0_104 = arith.constant 0 : index
    %285 = vector.load %arg15[%284, %c0_104] : memref<8x16xf32, #tpu.memory_space<vmem>>, vector<1x16xf32>
    %286 = arith.index_cast %c7_i32 : i32 to index
    %c0_105 = arith.constant 0 : index
    %287 = vector.load %arg16[%286, %c0_105] : memref<8x16xf32, #tpu.memory_space<vmem>>, vector<1x16xf32>
    %288 = vector.broadcast %285 : vector<1x16xf32> to vector<16x16xf32>
    %289 = arith.mulf %288, %67 : vector<16x16xf32>
    %290 = math.exp %289 : vector<16x16xf32>
    %291 = arith.mulf %290, %266 : vector<16x16xf32>
    %292 = vector.broadcast %282 : vector<16x1xf32> to vector<16x16xf32>
    %293 = vector.broadcast %287 : vector<1x16xf32> to vector<16x16xf32>
    %294 = arith.mulf %292, %293 : vector<16x16xf32>
    %295 = arith.addf %291, %294 : vector<16x16xf32>
    %296 = vector.broadcast %283 : vector<16x1xf32> to vector<16x16xf32>
    %297 = arith.mulf %295, %296 : vector<16x16xf32>
    %cst_106 = arith.constant dense<0.000000e+00> : vector<16xf32>
    %298 = vector.multi_reduction <add>, %297, %cst_106 [0] : vector<16x16xf32> to vector<16xf32>
    %299 = vector.shape_cast %298 : vector<16xf32> to vector<1x16xf32>
    %300 = arith.index_cast %c7_i32 : i32 to index
    %c0_107 = arith.constant 0 : index
    %301 = vector.load %arg18[%300, %c0_107] : memref<8x16xf32, #tpu.memory_space<vmem>>, vector<1x16xf32>
    tpu.vector_store %arg18[%300, %c0_107], %299 {strides = array<i32>} : memref<8x16xf32, #tpu.memory_space<vmem>>, vector<1x16xf32>,
    %c8_i32 = arith.constant 8 : i32
    %c0_108 = arith.constant 0 : index
    %c0_109 = arith.constant 0 : index
    %302 = vector.load %arg19[%c0_108, %c0_109] : memref<16x16xf32, #tpu.memory_space<vmem>>, vector<16x16xf32>
    tpu.vector_store %arg19[%c0_108, %c0_109], %295 {strides = array<i32>} : memref<16x16xf32, #tpu.memory_space<vmem>>, vector<16x16xf32>,
    %c0_110 = arith.constant 0 : index
    %c0_111 = arith.constant 0 : index
    %303 = vector.load %arg18[%c0_110, %c0_111] : memref<8x16xf32, #tpu.memory_space<vmem>>, vector<8x16xf32>
    %c0_112 = arith.constant 0 : index
    %c0_113 = arith.constant 0 : index
    %304 = vector.load %arg11[%c0_112, %c0_113] : memref<1x16xf32, #tpu.memory_space<vmem>>, vector<1x16xf32>
    %305 = vector.broadcast %304 : vector<1x16xf32> to vector<8x16xf32>
    %306 = arith.mulf %43, %305 : vector<8x16xf32>
    %307 = arith.addf %303, %306 : vector<8x16xf32>
    %cst_114 = arith.constant 0.000000e+00 : f32
    %308 = vector.broadcast %cst_114 : f32 to vector<8x16xf32>
    %309 = arith.subf %308, %11 : vector<8x16xf32>
    %310 = math.exp %309 : vector<8x16xf32>
    %cst_115 = arith.constant 1.000000e+00 : f32
    %311 = vector.broadcast %cst_115 : f32 to vector<8x16xf32>
    %312 = arith.addf %311, %310 : vector<8x16xf32>
    %313 = tpu.reciprocal %312 {approx = true} : vector<8x16xf32> -> vector<8x16xf32>
    %314 = arith.mulf %11, %313 : vector<8x16xf32>
    %315 = arith.mulf %307, %314 : vector<8x16xf32>
    %c0_116 = arith.constant 0 : index
    %c0_117 = arith.constant 0 : index
    %316 = vector.load %arg12[%c0_116, %c0_117] : memref<8x16xf32, #tpu.memory_space<vmem>>, vector<8x16xf32>
    %cst_118 = arith.constant dense<0.000000e+00> : vector<8x8xf32>
    %317 = tpu.matmul %315, %316, %cst_118 {dimension_numbers = #tpu.dot_dimension_numbers<[1], [1], [0], [0], [0, 0, 1, 0], [], []>} : vector<8x16xf32>, vector<8x16xf32>, vector<8x8xf32> -> vector<8x8xf32>
    %c0_119 = arith.constant 0 : index
    %c0_120 = arith.constant 0 : index
    %c0_121 = arith.constant 0 : index
    %318 = vector.load %arg13[%c0_119, %c0_120, %c0_121] : memref<1x8x8xf32, #tpu.memory_space<vmem>>, vector<1x8x8xf32>
    %319 = vector.shape_cast %318 : vector<1x8x8xf32> to vector<8x8xf32>
    %320 = vector.shape_cast %317 : vector<8x8xf32> to vector<1x8x8xf32>
    tpu.vector_store %arg13[%c0_119, %c0_120, %c0_121], %320 {strides = array<i32>} : memref<1x8x8xf32, #tpu.memory_space<vmem>>, vector<1x8x8xf32>,
    return
  }
  func.func @transform_0(%arg0: i32, %arg1: i32) -> (i32, i32, i32) {
    %c0_i32 = arith.constant 0 : i32
    %c0_i32_0 = arith.constant 0 : i32
    return %arg0, %arg1, %c0_i32 : i32, i32, i32
  }
  func.func @transform_1(%arg0: i32, %arg1: i32) -> (i32, i32) {
    %c0_i32 = arith.constant 0 : i32
    %c0_i32_0 = arith.constant 0 : i32
    %c0_i32_1 = arith.constant 0 : i32
    return %c0_i32, %c0_i32_0 : i32, i32
  }
  func.func @transform_2(%arg0: i32, %arg1: i32) -> (i32, i32) {
    %c0_i32 = arith.constant 0 : i32
    %c0_i32_0 = arith.constant 0 : i32
    %c0_i32_1 = arith.constant 0 : i32
    return %c0_i32, %c0_i32_0 : i32, i32
  }
  func.func @transform_3(%arg0: i32, %arg1: i32) -> (i32, i32) {
    %c0_i32 = arith.constant 0 : i32
    %c0_i32_0 = arith.constant 0 : i32
    %c0_i32_1 = arith.constant 0 : i32
    return %c0_i32, %c0_i32_0 : i32, i32
  }
  func.func @transform_4(%arg0: i32, %arg1: i32) -> (i32, i32) {
    %c0_i32 = arith.constant 0 : i32
    %c0_i32_0 = arith.constant 0 : i32
    %c0_i32_1 = arith.constant 0 : i32
    return %c0_i32, %c0_i32_0 : i32, i32
  }
  func.func @transform_5(%arg0: i32, %arg1: i32) -> (i32, i32) {
    %c0_i32 = arith.constant 0 : i32
    %c0_i32_0 = arith.constant 0 : i32
    %c0_i32_1 = arith.constant 0 : i32
    return %c0_i32, %c0_i32_0 : i32, i32
  }
  func.func @transform_6(%arg0: i32, %arg1: i32) -> (i32, i32) {
    %c0_i32 = arith.constant 0 : i32
    %c0_i32_0 = arith.constant 0 : i32
    %c0_i32_1 = arith.constant 0 : i32
    return %c0_i32, %c0_i32_0 : i32, i32
  }
  func.func @transform_7(%arg0: i32, %arg1: i32) -> (i32, i32) {
    %c0_i32 = arith.constant 0 : i32
    %c0_i32_0 = arith.constant 0 : i32
    %c0_i32_1 = arith.constant 0 : i32
    return %c0_i32, %c0_i32_0 : i32, i32
  }
  func.func @transform_8(%arg0: i32, %arg1: i32) -> (i32, i32) {
    %c0_i32 = arith.constant 0 : i32
    %c0_i32_0 = arith.constant 0 : i32
    %c0_i32_1 = arith.constant 0 : i32
    return %c0_i32, %c0_i32_0 : i32, i32
  }
  func.func @transform_9(%arg0: i32, %arg1: i32) -> (i32, i32) {
    %c0_i32 = arith.constant 0 : i32
    %c0_i32_0 = arith.constant 0 : i32
    %c0_i32_1 = arith.constant 0 : i32
    return %c0_i32, %c0_i32_0 : i32, i32
  }
  func.func @transform_10(%arg0: i32, %arg1: i32) -> (i32, i32) {
    %c0_i32 = arith.constant 0 : i32
    %c0_i32_0 = arith.constant 0 : i32
    %c0_i32_1 = arith.constant 0 : i32
    return %c0_i32, %c0_i32_0 : i32, i32
  }
  func.func @transform_11(%arg0: i32, %arg1: i32) -> (i32, i32, i32) {
    %c0_i32 = arith.constant 0 : i32
    %c0_i32_0 = arith.constant 0 : i32
    return %arg0, %arg1, %c0_i32 : i32, i32, i32
  }
}

</mosaic_0001>

<bundles_post_ra>
// kernel: tpu_custom_call.1
= control target key start
LH: loop header
LB: loop body
LE: loop exit
PB: predicated region body
PF: predicated region fallthrough
CT: control target
= control target key end

     0   :  { %s2540_s0 = inlined_call_operand.vmem [shape: f32[2,8,8], index: 0, kind: input, shape index: {}]   ;;  %s2541_s1 = inlined_call_operand.vmem [shape: f32[32,8], index: 1, kind: input, shape index: {}]   ;;  %s2542_s2 = inlined_call_operand.vmem [shape: f32[4,16], index: 2, kind: input, shape index: {}]   ;;  %s2543_s3 = inlined_call_operand.vmem [shape: f32[1,16], index: 3, kind: input, shape index: {}]   ;;  %s2544_s4 = inlined_call_operand.vmem [shape: f32[128,16], index: 4, kind: input, shape index: {}]   ;;  %s2545_s5 = inlined_call_operand.vmem [shape: f32[16,128], index: 5, kind: input, shape index: {}]   ;;  %s2546_s6 = inlined_call_operand.vmem [shape: f32[1,16], index: 6, kind: input, shape index: {}]   ;;  %s2547_s7 = inlined_call_operand.vmem [shape: f32[32,16], index: 7, kind: input, shape index: {}]   ;;  %s2548_s8 = inlined_call_operand.vmem [shape: f32[16,16], index: 8, kind: input, shape index: {}]   ;;  %s2549_s9 = inlined_call_operand.vmem [shape: f32[1,16], index: 9, kind: input, shape index: {}]   ;;  %s2550_s10 = inlined_call_operand.vmem [shape: f32[8,16], index: 10, kind: input, shape index: {}]   ;;  %s2551_s11 = inlined_call_operand.hbm [shape: f32[2,8,8], index: 11, kind: output, shape index: {}]  }
   0x1   :  { %2552 = sst [smem:[#allocation11_spill]] %s2540_s0 }
   0x2   :  { %16 = vsyncpa [#allocation9], 0 }
   0x3   :  { %18 = vsyncpa [#allocation9 + $0x1], 0  ;;  %s2005_s17 = smov 0   ;;  %s2007_s18 = smov 0  }
   0x4   :  { %s2009_s19 = smov 0   ;;  %s2011_s20 = smov 0  }
   0x5   :  { %s2013_s21 = smov 0   ;;  %s2015_s22 = smov 0  }
   0x6 LB: > { %s1545_s23 = sadd.s32 4294967295, %s1938_s22   ;;  %s1546_s24 = sadd.s32 4294967294, %s1938_s22   ;;  %s1938_s22 = sphi %s2015_s22, %s24_s22   ;;  %s1934_s21 = sphi %s2013_s21, %s2564_s21   ;;  %s1930_s20 = sphi %s2011_s20, %s2563_s20   ;;  %s1926_s19 = sphi %s2009_s19, %s2562_s19   ;;  %s1922_s18 = sphi %s2007_s18, %s2561_s18   ;;  %s1918_s17 = sphi %s2005_s17, %s2560_s17  }
   0x7   : > { %s36_s25 = sadd.s32 1, %s1934_s21  ;;  %s283_s26 = sadd.s32 1, %s1926_s19 }
   0x8   : > { %p38_p0 = scmp.ge.s32.totalorder %s36_s25, 2  ;;  %p293_p1 = scmp.ne.s32.totalorder %s1926_s19, %s1922_s18 }
   0x9   : > { %p294_p2 = scmp.eq.s32.totalorder %s1545_s23, 1  ;;  %p299_p3 = scmp.ne.s32.totalorder %s1922_s18, %s1918_s17 }
   0xa   : > { %s2566_s25 = smov (%p38_p0, %s36_s25), 0  ;;  %p300_p5 = scmp.eq.s32.totalorder %s1546_s24, 1 }
   0xb   : > { %p2045_p4 = por %p294_p2, %p293_p1  ;;  %s278_s28 = ssub.s32 %s1934_s21, %s2566_s25 }
   0xc   : > { %p1549_p6 = scmp.ge.s32.totalorder %s1938_s22, 1  ;;  %p281_p7 = scmp.eq.s32.totalorder %s278_s28, 0 }
   0xd   : > { %p2052_p8 = por %p300_p5, %p299_p3  ;;  %p358_p9 = scmp.lt.s32.totalorder %s1938_s22, 3 }
   0xe   : > { %s2058_s30 = scalar_select %p281_p7, %s1926_s19, %s283_s26  }
   0xf   : > { %p359_p10 = pnand %p1549_p6, %p358_p9 }
  0x10   : > { %v424_v0 = vld [vmem:[%s2541_s1] sm:$0xff] (!%p359_p10)  ;;  %v425_v1 = vld [vmem:[%s2541_s1 + $0x8] sm:$0xff] (!%p359_p10)  ;;  %vm428_vm0 = vcmask (!%p359_p10), 64512   ;;  %v1940_v2 = vmov (!%p359_p10), 0.0|0.0   ;;  %p400_p11 = scmp.lt.s32.totalorder (!%p359_p10), %s1930_s20, 1  ;;  %vm411_vm2 = vcmask (!%p359_p10), 130048  }
  0x11   : > { %362 = sbr.rel (%p359_p10) target bundleno = 1191 (0x4a7), region = 64  ;;  %1714 = vmatprep.subr.bf16.mxu0 (!%p359_p10), %v1940_v2  ;;  %v1715_v3 = vpack.c.bf16 (!%p359_p10), %v425_v1, %v424_v0  ;;  %vm2069_vm1 = vmpackc.low (!%p359_p10), %vm428_vm0, %vm428_vm0  ;;  %1722 = vmatprep.subr.bf16.mxu1 (!%p359_p10), %v1940_v2  ;;  %v562_v5 = vld [vmem:[%s2544_s4] sm:$0xff] (!%p359_p10)  ;;  %vm1941_vm3 = vmmov (!%p359_p10), 0   ;;  %v1942_v6 = vmov (!%p359_p10), 0.0   ;;  %v563_v7 = vld [vmem:[%s2544_s4 + $0x8] sm:$0xff] (!%p359_p10)  ;;  %s2559_s0 = sld [smem:[#allocation11_spill]] (!%p359_p10) }
  0x12   : > { %1656 = vmatprep.mubr.msk.f32.mxu0 (!%p359_p10), %vm1941_vm3, %v1942_v6  ;;  %vm2085_vm4 = vmpackc.low (!%p359_p10), %vm411_vm2, %vm411_vm2  ;;  %412 = vst.msk [vmem:[#allocation7] sm:$0xff] (!%p359_p10), %vm411_vm2, %v1942_v6  ;;  %1691 = vmatprep.mubr.msk.f32.mxu1 (!%p359_p10), %vm1941_vm3, %v1942_v6  ;;  %v1723_v9 = vpack.c.bf16 (!%p359_p10), %v563_v7, %v562_v5  ;;  %v426_v10 = vld [vmem:[%s2541_s1 + $0x10] sm:$0xff] (!%p359_p10)  ;;  %v427_v11 = vld [vmem:[%s2541_s1 + $0x18] sm:$0xff] (!%p359_p10)  ;;  %vm414_vm5 = vcmask (!%p359_p10), 124928   ;;  %v897_v7 = vlaneseq (!%p359_p10)  ;;  %s1943_s24 = smov (!%p359_p10), 112   ;;  %vm957_vm14 = vcmask (!%p359_p10), 122880  }
  0x13   : > { %413 = vst.msk [vmem:[#allocation7 + $0x8] sm:$0xff] (!%p359_p10), %vm411_vm2, %v1942_v6  ;;  %1717 = vmatpush3.bf16.xpose.msk.msra.mxu0 (!%p359_p10), %vm2069_vm1, %v1715_v3  ;;  %v564_v12 = vld [vmem:[%s2544_s4 + $0x10] sm:$0xff] (!%p359_p10)  ;;  %v565_v13 = vld [vmem:[%s2544_s4 + $0x18] sm:$0xff] (!%p359_p10)  ;;  %v1719_v14 = vpack.c.bf16 (!%p359_p10), %v427_v11, %v426_v10  ;;  %v566_v17 = vld [vmem:[%s2544_s4 + $0x20] sm:$0xff] (!%p359_p10) }
  0x14   : > { %1718 = vmatprep.subr.bf16.mxu0 (!%p359_p10), %v1940_v2  ;;  %1725 = vmatpush3.bf16.xpose.msk.msra.mxu1 (!%p359_p10), %vm2085_vm4, %v1723_v9  ;;  %v1727_v15 = vpack.c.bf16 (!%p359_p10), %v565_v13, %v564_v12  ;;  %v567_v18 = vld [vmem:[%s2544_s4 + $0x28] sm:$0xff] (!%p359_p10)  ;;  %415 = vst.msk [vmem:[#allocation2] sm:$0x7] (!%p359_p10), %vm414_vm5, %v1942_v6  ;;  %v568_v20 = vld [vmem:[%s2544_s4 + $0x30] sm:$0xff] (!%p359_p10)  ;;  %v569_v21 = vld [vmem:[%s2544_s4 + $0x38] sm:$0xff] (!%p359_p10)  ;;  %v898_v12 = vand.u32 (!%p359_p10), 127, %v897_v7 }
  0x15   : > { %1726 = vmatprep.subr.bf16.mxu1 (!%p359_p10), %v1940_v2  ;;  %v1731_v19 = vpack.c.bf16 (!%p359_p10), %v567_v18, %v566_v17  ;;  %v1735_v22 = vpack.c.bf16 (!%p359_p10), %v569_v21, %v568_v20  ;;  %v570_v23 = vld [vmem:[%s2544_s4 + $0x40] sm:$0xff] (!%p359_p10)  ;;  %v571_v24 = vld [vmem:[%s2544_s4 + $0x48] sm:$0xff] (!%p359_p10)  ;;  %v572_v26 = vld [vmem:[%s2544_s4 + $0x50] sm:$0xff] (!%p359_p10) }
  0x16   : > { %v1739_v25 = vpack.c.bf16 (!%p359_p10), %v571_v24, %v570_v23  ;;  %v573_v27 = vld [vmem:[%s2544_s4 + $0x58] sm:$0xff] (!%p359_p10)  ;;  %v574_v29 = vld [vmem:[%s2544_s4 + $0x60] sm:$0xff] (!%p359_p10)  ;;  %v575_v30 = vld [vmem:[%s2544_s4 + $0x68] sm:$0xff] (!%p359_p10)  ;;  %vm959_vm6 = vcmp.eq.s32.totalorder (!%p359_p10), %v898_v12, 1  ;;  %vm901_vm7 = vcmp.eq.s32.totalorder (!%p359_p10), %v898_v12, 0  ;;  %vm1016_vm8 = vcmp.eq.s32.totalorder (!%p359_p10), %v898_v12, 2 }
  0x17   : > { %v1743_v28 = vpack.c.bf16 (!%p359_p10), %v573_v27, %v572_v26  ;;  %v1747_v31 = vpack.c.bf16 (!%p359_p10), %v575_v30, %v574_v29  ;;  %v699_v32 = vld [vmem:[%s2545_s5] sm:$0xff] (!%p359_p10)  ;;  %v700_v33 = vld [vmem:[%s2545_s5 + $0x8] sm:$0xff] (!%p359_p10)  ;;  %v576_v35 = vld [vmem:[%s2544_s4 + $0x70] sm:$0xff] (!%p359_p10)  ;;  %v2247_v20 = vsel (!%p359_p10), %vm901_vm7, 1.0, %v1942_v6  ;;  %vm1073_vm9 = vcmp.eq.s32.totalorder (!%p359_p10), %v898_v12, 3 }
  0x18   : > { %s401_s15 = scalar_select %p400_p11, %s1930_s20, 1  ;;  %v1755_v34 = vpack.c.bf16 %v700_v33, %v699_v32  ;;  %v577_v36 = vld [vmem:[%s2544_s4 + $0x78] sm:$0xff]  ;;  %v1557_v40 = vld [vmem:[%s2542_s2] ss:$0 sm:$0xff]  ;;  %v1558_v41 = vld [vmem:[%s2542_s2 + $0x1] ss:$0 sm:$0xff] }
  0x19   : > { %v1751_v37 = vpack.c.bf16 %v577_v36, %v576_v35  ;;  %v1559_v42 = vld [vmem:[%s2542_s2 + $0x2] ss:$0 sm:$0xff]  ;;  %v1560_v49 = vld [vmem:[%s2542_s2 + $0x3] ss:$0 sm:$0xff]  ;;  %v1561_v54 = vld [vmem:[%s2543_s3] ss:$0 sm:$0xff] }
  0x1a   : > { %s1551_s28 = sshll.u32 %s401_s15, 3  ;;  %v787_v63 = vld [vmem:[%s2547_s7] sm:$0xff]  ;;  %v789_v3 = vld [vmem:[%s2547_s7 + $0x10] sm:$0xff]  ;;  %v790_v4 = vld [vmem:[%s2547_s7 + $0x18] sm:$0xff]  ;;  %v2260_v30 = vsel %vm1073_vm9, 1.0, %v1942_v6  ;;  %vm1130_vm10 = vcmp.eq.s32.totalorder %v898_v12, 4 }
  0x1b   : > { %1721 = vmatpush3.bf16.xpose.msk.msra.mxu0 %vm2069_vm1, %v1719_v14  ;;  %s406_s14 = scalar_lea.vmem %s2559_s0, %s1551_s28  ;;  %v1579_v5 = vld [vmem:[%s2546_s6] ss:$0 sm:$0xff]  ;;  %vm1187_vm11 = vcmp.eq.s32.totalorder %v898_v12, 5  ;;  %vm1244_vm12 = vcmp.eq.s32.totalorder %v898_v12, 6  ;;  %vm1301_vm13 = vcmp.eq.s32.totalorder %v898_v12, 7  ;;  %s1613_s28 = sshll.u32 %s1930_s20, 7 }
  0x1c   : > { %1754 = vmatprep.subr.bf16.mxu0 %v1940_v2  ;;  %1729 = vmatpush3.bf16.xpose.msk.msra.mxu1 %vm2085_vm4, %v1727_v15  ;;  %v423_v16 = vld [vmem:[%s406_s14] sm:$0xff]  ;;  %s2492_s0 = scalar_lea.hbm %s2551_s11, %s1613_s28  ;;  %s1944_s20 = smov [#allocation8]  }
  0x1d   : > { %1730 = vmatprep.subr.bf16.mxu1 %v1940_v2 }
  0x22   : > { %1657 = vmatmul.mubr.msk.f32.vlgmr.msra.gmra.mrb[0].mxu0 %vm428_vm0, %v423_v16 }
  0x23   : > { %1698 = vmatprep.mubr.msk.f32.mxu0 %vm1941_vm3, %v1942_v6  ;;  %1756 = vmatpush3.bf16.xpose.msra.mxu0 %v1755_v34 }
  0x24   : > { %1733 = vmatpush3.bf16.xpose.msk.msra.mxu1 %vm2085_vm4, %v1731_v19  ;;  %v2244_v19 = vsel %vm959_vm6, 1.0, %v1942_v6 }
  0x25   : > { %1734 = vmatprep.subr.bf16.mxu1 %v1940_v2 }
  0x2c   : > { %1737 = vmatpush3.bf16.xpose.msk.msra.mxu1 %vm2085_vm4, %v1735_v22  ;;  %v2251_v22 = vsel %vm1016_vm8, 1.0, %v1942_v6 }
  0x2d   : > { %1738 = vmatprep.subr.bf16.mxu1 %v1940_v2 }
  0x34   : > { %1741 = vmatpush3.bf16.xpose.msk.msra.mxu1 %vm2085_vm4, %v1739_v25 }
  0x35   : > { %1742 = vmatprep.subr.bf16.mxu1 %v1940_v2 }
  0x3c   : > { %1745 = vmatpush3.bf16.xpose.msk.msra.mxu1 %vm2085_vm4, %v1743_v28 }
  0x3d   : > { %1746 = vmatprep.subr.bf16.mxu1 %v1940_v2 }
  0x44   : > { %1749 = vmatpush3.bf16.xpose.msk.msra.mxu1 %vm2085_vm4, %v1747_v31 }
  0x45   : > { %1750 = vmatprep.subr.bf16.mxu1 %v1940_v2  ;;  %v788_v2 = vld [vmem:[%s2547_s7 + $0x8] sm:$0xff] }
  0x4c   : > { %1753 = vmatpush3.bf16.xpose.msk.msra.mxu1 %vm2085_vm4, %v1751_v37  ;;  %v2267_v37 = vsel %vm1130_vm10, 1.0, %v1942_v6 }
  0xf5   : > { %v2188_v38 = vpop.f32.mrb[0].mxu0 }
  0xf6   : > { %515 = vst.msk [vmem:[#allocation2 + $0x3] sm:$0xff] %vm411_vm2, %v2188_v38  ;;  %v1658_v39 = vpop.f32.mrb[1].mxu0 }
  0xfd   : > { %v516_v43 = vld [vmem:[#allocation2] sm:$0xff] }
  0xfe   : > { %v524_v44 = vld [vmem:[#allocation2 + $0x1] sm:$0xff]  ;;  %v522_v46 = vmul.f32 %v1557_v40, %v516_v43  ;;  %v2274_v43 = vsel %vm1187_vm11, 1.0, %v1942_v6 }
  0xff   : > { %v532_v45 = vld [vmem:[#allocation2 + $0x2] sm:$0xff]  ;;  %v530_v47 = vmul.f32 %v1558_v41, %v524_v44 }
 0x100   : > { %v540_v48 = vld [vmem:[#allocation2 + $0x3] sm:$0xff]  ;;  %v538_v51 = vmul.f32 %v1559_v42, %v532_v45 }
 0x101   : > { %v531_v50 = vadd.f32 %v530_v47, %v522_v46  ;;  %v546_v53 = vmul.f32 %v1560_v49, %v540_v48  ;;  %v2281_v48 = vsel %vm1244_vm12, 1.0, %v1942_v6  ;;  %v2284_v49 = vsel %vm1301_vm13, 1.0, %v1942_v6 }
 0x103   : > { %v539_v52 = vadd.f32 %v538_v51, %v531_v50 }
 0x105   : > { %v547_v55 = vadd.f32 %v546_v53, %v539_v52 }
 0x107   : > { %v555_v56 = vadd.f32 %v1561_v54, %v547_v55 }
 0x109   : > { %v556_v57 = vsub.f32 0.0, %v555_v56 }
 0x10b   : > { %v557_v58 = vmul.f32 1.442695, %v556_v57 }
 0x10d   : > { %1816 = vpow2.f32 %v557_v58 }
 0x117   : > { %v1817_v59 = vpop.eup %1816 }
 0x118   : > { %v559_v60 = vadd.f32 1.0, %v1817_v59 }
 0x11a   : > { %1818 = vrcp.f32 %v559_v60 }
 0x124   : > { %v1819_v61 = vpop.eup %1818 }
 0x125   : > { %v2207_v62 = vmul.f32 %v1819_v61, %v555_v56 }
 0x127   : > { %1692 = vmatmul.mubr.msk.f32.vlgmr.msra.gmra.mrb[0].mxu1 %vm411_vm2, %v2207_v62  ;;  %1701 = vmatprep.subr.msk.mxu0 %vm411_vm2, %v2207_v62 }
 0x1fa   : > { %v695_v0 = vpop.f32.mrb[0].mxu1 }
 0x1fb   : > { %v1693_v1 = vpop.f32.mrb[1].mxu1  ;;  %1699 = vmatmul.mubr.f32.vlgmr.msra.gmra.mrb[2].mxu0 %v695_v0 }
 0x1fc   : > { %1702 = vmatpush3.xpose.msk.msra.mxu0 %vm411_vm2, %v2207_v62  ;;  %1703 = vmatprep.mubr.msk.f32.mxu0 %vm411_vm2, %v787_v63 }
 0x1fd   : > { %1709 = vmatprep.subr.mxu0 %v1942_v6 }
 0x1ff   : > { %1704 = vmatmul.mubr.msk.f32.vlgmr.msra.gmra.mrb[4].mxu0 %vm411_vm2, %v788_v2 }
 0x200   : > { %1706 = vmatprep.mubr.msk.f32.mxu0 %vm411_vm2, %v789_v3 }
 0x203   : > { %1707 = vmatmul.mubr.msk.f32.gmra.mrb[6].mxu0 %vm411_vm2, %v790_v4 }
 0x204   : > { %1711 = vmatprep.mubr.msk.f32.mxu0 %vm1941_vm3, %v1942_v6 }
 0x2ce   : > { %v774_v8 = vpop.f32.mrb[2].mxu0 }
 0x2cf   : > { %v2237_v9 = vadd.f32 %v1579_v5, %v774_v8  ;;  %v1700_v10 = vpop.f32.mrb[3].mxu0 }
 0x2d1   : > { %v779_v11 = vand.u32 2147483647, %v2237_v9  ;;  %v778_v55 = vmax.f32 %v2237_v9, 0.0 }
 0x2d2   : > { %v1705_v13 = vpop.f32.mrb[4].mxu0 }
 0x2d3   : > { %v780_v14 = vsub.f32 0.0, %v779_v11  ;;  %889 = vst.msk [vmem:[#allocation5 + $0x8] sm:$0xff] %vm428_vm0, %v1705_v13  ;;  %v869_v15 = vpop.f32.mrb[5].mxu0 }
 0x2d4   : > { %888 = vst.msk [vmem:[#allocation5] sm:$0xff] %vm428_vm0, %v869_v15 }
 0x2d5   : > { %v781_v16 = vmul.f32 1.442695, %v780_v14 }
 0x2d6   : > { %v1708_v17 = vpop.f32.mrb[6].mxu0 }
 0x2d7   : > { %1820 = vpow2.f32 %v781_v16  ;;  %891 = vst.msk [vmem:[#allocation5 + $0x18] sm:$0xff] %vm428_vm0, %v1708_v17  ;;  %v879_v18 = vpop.f32.mrb[7].mxu0 }
 0x2d8   : > { %890 = vst.msk [vmem:[#allocation5 + $0x10] sm:$0xff] %vm428_vm0, %v879_v18 }
 0x2da   : > { %v963_v21 = vld [vmem:[#allocation5 + $0x8] sm:$0xff] }
 0x2db   : > { %v967_v23 = vmul.f32 %v2244_v19, %v963_v21  ;;  %v909_v24 = vmul.f32 %v2247_v20, %v963_v21  ;;  %v904_v25 = vld [vmem:[#allocation5] sm:$0xff]  ;;  %v1024_v28 = vmul.f32 %v2251_v22, %v963_v21  ;;  %v1081_v34 = vmul.f32 %v2260_v30, %v963_v21 }
 0x2dc   : > { %v908_v29 = vmul.f32 %v2247_v20, %v904_v25  ;;  %v1023_v35 = vmul.f32 %v2251_v22, %v904_v25  ;;  %v1138_v41 = vmul.f32 %v2267_v37, %v963_v21  ;;  %v1080_v42 = vmul.f32 %v2260_v30, %v904_v25 }
 0x2dd   : > { %v973_v26 = vsel %vm428_vm0, %v967_v23, 0.0  ;;  %v915_v27 = vsel %vm428_vm0, %v909_v24, 0.0  ;;  %v1030_v32 = vsel %vm428_vm0, %v1024_v28, 0.0  ;;  %v1087_v39 = vsel %vm428_vm0, %v1081_v34, 0.0 }
 0x2de   : > { %974 = vadd.xlane.f32.xlu1 %v973_v26  ;;  %916 = vadd.xlane.f32.xlu0 %v915_v27  ;;  %v912_v33 = vsel %vm428_vm0, %v908_v29, 0.0  ;;  %v1027_v40 = vsel %vm428_vm0, %v1023_v35, 0.0  ;;  %v1144_v44 = vsel %vm428_vm0, %v1138_v41, 0.0  ;;  %v1084_v45 = vsel %vm428_vm0, %v1080_v42, 0.0  ;;  %v907_v63 = vld [vmem:[#allocation5 + $0x18] sm:$0xff] }
 0x2df   : > { %v1195_v46 = vmul.f32 %v2274_v43, %v963_v21  ;;  %v1137_v47 = vmul.f32 %v2267_v37, %v904_v25  ;;  %v1252_v52 = vmul.f32 %v2281_v48, %v963_v21  ;;  %v1194_v53 = vmul.f32 %v2274_v43, %v904_v25  ;;  %v906_v0 = vld [vmem:[#allocation5 + $0x10] sm:$0xff] }
 0x2e0   : > { %v1309_v57 = vmul.f32 %v2284_v49, %v963_v21  ;;  %v1251_v60 = vmul.f32 %v2281_v48, %v904_v25  ;;  %v966_v3 = vmul.f32 %v2244_v19, %v904_v25  ;;  %v1308_v4 = vmul.f32 %v2284_v49, %v904_v25 }
 0x2e1   : > { %v1821_v31 = vpop.eup %1820  ;;  %v1201_v50 = vsel %vm428_vm0, %v1195_v46, 0.0  ;;  %v1141_v51 = vsel %vm428_vm0, %v1137_v47, 0.0  ;;  %v1258_v6 = vsel %vm428_vm0, %v1252_v52, 0.0  ;;  %v1198_v59 = vsel %vm428_vm0, %v1194_v53, 0.0  ;;  %v1381_v47 = vld [vmem:[%s2550_s10] sm:$0xff] }
 0x2e2   : > { %v783_v36 = vadd.f32 1.0, %v1821_v31  ;;  %1031 = vadd.xlane.f32.xlu1 %v1030_v32  ;;  %913 = vadd.xlane.f32.xlu0 %v912_v33  ;;  %v1315_v1 = vsel %vm428_vm0, %v1309_v57, 0.0  ;;  %v1255_v2 = vsel %vm428_vm0, %v1251_v60, 0.0  ;;  %v911_v5 = vmul.f32 %v2247_v20, %v907_v63  ;;  %v900_v60 = vld [vmem:[#allocation7 + $0x8] sm:$0xff] }
 0x2e3   : > { %v910_v7 = vmul.f32 %v2247_v20, %v906_v0  ;;  %v970_v8 = vsel %vm428_vm0, %v966_v3, 0.0  ;;  %v1312_v9 = vsel %vm428_vm0, %v1308_v4, 0.0  ;;  %v969_v12 = vmul.f32 %v2244_v19, %v907_v63  ;;  %1710 = vmatpush3.xpose.msk.msra.mxu0 %vm411_vm2, %v1381_v47 }
 0x2e4   : > { %1822 = vlog2.f32 %v783_v36  ;;  %v921_v10 = vsel %vm428_vm0, %v911_v5, 0.0  ;;  %v968_v13 = vmul.f32 %v2244_v19, %v906_v0  ;;  %v1026_v16 = vmul.f32 %v2251_v22, %v907_v63 }
 0x2e5   : > { %v918_v11 = vsel %vm428_vm0, %v910_v7, 0.0  ;;  %v979_v14 = vsel %vm428_vm0, %v969_v12, 0.0  ;;  %v1025_v17 = vmul.f32 %v2251_v22, %v906_v0  ;;  %v1083_v21 = vmul.f32 %v2260_v30, %v907_v63 }
 0x2e6   : > { %1088 = vadd.xlane.f32.xlu1 %v1087_v39  ;;  %1028 = vadd.xlane.f32.xlu0 %v1027_v40  ;;  %v976_v15 = vsel %vm428_vm0, %v968_v13, 0.0  ;;  %v1036_v18 = vsel %vm428_vm0, %v1026_v16, 0.0  ;;  %v1082_v19 = vmul.f32 %v2260_v30, %v906_v0  ;;  %v1370_v23 = vsub.f32 0.0, %v2188_v38 }
 0x2e7   : > { %v1033_v20 = vsel %vm428_vm0, %v1025_v17, 0.0  ;;  %v1093_v24 = vsel %vm428_vm0, %v1083_v21, 0.0  ;;  %v1140_v22 = vmul.f32 %v2267_v37, %v907_v63  ;;  %v1139_v26 = vmul.f32 %v2267_v37, %v906_v0 }
 0x2e8   : > { %v1090_v25 = vsel %vm428_vm0, %v1082_v19, 0.0  ;;  %v1371_v27 = vmul.f32 1.442695, %v1370_v23  ;;  %v1197_v30 = vmul.f32 %v2274_v43, %v907_v63  ;;  %v1196_v31 = vmul.f32 %v2274_v43, %v906_v0 }
 0x2e9   : > { %v1150_v28 = vsel %vm428_vm0, %v1140_v22, 0.0  ;;  %v1147_v29 = vsel %vm428_vm0, %v1139_v26, 0.0  ;;  %v1254_v34 = vmul.f32 %v2281_v48, %v907_v63  ;;  %v1253_v35 = vmul.f32 %v2281_v48, %v906_v0  ;;  %v896_v48 = vld [vmem:[%s2548_s8 + $0x8] sm:$0xff] }
 0x2ea   : > { %1145 = vadd.xlane.f32.xlu1 %v1144_v44  ;;  %1085 = vadd.xlane.f32.xlu0 %v1084_v45  ;;  %1824 = vpow2.f32 %v1371_v27  ;;  %v1207_v32 = vsel %vm428_vm0, %v1197_v30, 0.0  ;;  %v1204_v33 = vsel %vm428_vm0, %v1196_v31, 0.0  ;;  %v1311_v39 = vmul.f32 %v2284_v49, %v907_v63 }
 0x2eb   : > { %v1264_v36 = vsel %vm428_vm0, %v1254_v34, 0.0  ;;  %v1261_v37 = vsel %vm428_vm0, %v1253_v35, 0.0  ;;  %v1310_v40 = vmul.f32 %v2284_v49, %v906_v0 }
 0x2ec   : > { %v1321_v41 = vsel %vm428_vm0, %v1311_v39, 0.0 }
 0x2ed   : > { %v1318_v42 = vsel %vm428_vm0, %v1310_v40, 0.0 }
 0x2ee   : > { %v1823_v54 = vpop.eup %1822  ;;  %1202 = vadd.xlane.f32.xlu1 %v1201_v50  ;;  %1142 = vadd.xlane.f32.xlu0 %v1141_v51 }
 0x2ef   : > { %v785_v56 = vmul.f32 0.6931472, %v1823_v54 }
 0x2f1   : > { %v786_v58 = vadd.f32 %v785_v56, %v778_v55 }
 0x2f2   : > { %1259 = vadd.xlane.f32.xlu1 %v1258_v6  ;;  %1199 = vadd.xlane.f32.xlu0 %v1198_v59 }
 0x2f3   : > { %892 = vst.msk [vmem:[#allocation3] sm:$0xff] %vm411_vm2, %v786_v58  ;;  %v893_v61 = vmul.f32 %v786_v58, %v2207_v62 }
 0x2f4   : > { %v1825_v43 = vpop.eup %1824 }
 0x2f5   : > { %894 = vst.msk [vmem:[#allocation4] sm:$0xff] %vm411_vm2, %v893_v61  ;;  %v1373_v44 = vadd.f32 1.0, %v1825_v43  ;;  %v2353_v61 = vld [vmem:[%s2548_s8] sm:$0xff] }
 0x2f6   : > { %1316 = vadd.xlane.f32.xlu1 %v1315_v1  ;;  %1256 = vadd.xlane.f32.xlu0 %v1255_v2 }
 0x2f7   : > { %1826 = vrcp.f32 %v1373_v44 }
 0x2fa   : > { %971 = vadd.xlane.f32.xlu1 %v970_v8  ;;  %1313 = vadd.xlane.f32.xlu0 %v1312_v9  ;;  %v1586_v49 = vld [vmem:[#allocation3] ss:$0 sm:$0xff]  ;;  %v1589_v51 = vld [vmem:[#allocation3 + $0x1] ss:$0 sm:$0xff]  ;;  %v1592_v54 = vld [vmem:[#allocation3 + $0x2] ss:$0 sm:$0xff] }
 0x2fb   : > { %v931_v50 = vmul.f32 %v1586_v49, %v896_v48  ;;  %v989_v53 = vmul.f32 %v1589_v51, %v896_v48  ;;  %v1046_v55 = vmul.f32 %v1592_v54, %v896_v48  ;;  %v2345_v56 = vld [vmem:[#allocation3 + $0x3] ss:$0 sm:$0xff]  ;;  %v2348_v6 = vld [vmem:[#allocation3 + $0x4] ss:$0 sm:$0xff]  ;;  %v2356_v1 = vld [vmem:[#allocation3 + $0x5] ss:$0 sm:$0xff]  ;;  %v930_v8 = vmul.f32 %v1586_v49, %v2353_v61 }
 0x2fc   : > { %v1103_v58 = vmul.f32 %v2345_v56, %v896_v48  ;;  %v1160_v0 = vmul.f32 %v2348_v6, %v896_v48  ;;  %v1587_v3 = vld [vmem:[#allocation4] ss:$0 sm:$0xff]  ;;  %v2362_v12 = vld [vmem:[#allocation3 + $0x6] ss:$0 sm:$0xff]  ;;  %v2373_v22 = vld [vmem:[#allocation4 + $0x2] ss:$0 sm:$0xff] }
 0x2fd   : > { %v934_v52 = vmul.f32 1.442695, %v931_v50  ;;  %v1049_v57 = vmul.f32 1.442695, %v1046_v55  ;;  %v1274_v19 = vmul.f32 %v2362_v12, %v896_v48  ;;  %v2383_v35 = vld [vmem:[#allocation4 + $0x3] ss:$0 sm:$0xff] }
 0x2fe   : > { %922 = vadd.xlane.f32.xlu1 %v921_v10  ;;  %919 = vadd.xlane.f32.xlu0 %v918_v11  ;;  %v1106_v63 = vmul.f32 1.442695, %v1103_v58  ;;  %v1163_v9 = vmul.f32 1.442695, %v1160_v0  ;;  %v1217_v10 = vmul.f32 %v2356_v1, %v896_v48  ;;  %v2402_v55 = vld [vmem:[#allocation4 + $0x5] ss:$0 sm:$0xff] }
 0x2ff   : > { %1828 = vpow2.f32 %v934_v52  ;;  %v1277_v31 = vmul.f32 1.442695, %v1274_v19  ;;  %v1102_v52 = vmul.f32 %v2345_v56, %v2353_v61  ;;  %v1159_v56 = vmul.f32 %v2348_v6, %v2353_v61 }
 0x300   : > { %v1220_v21 = vmul.f32 1.442695, %v1217_v10 }
 0x301   : > { %v1827_v45 = vpop.eup %1826 }
 0x302   : > { %980 = vadd.xlane.f32.xlu1 %v979_v14  ;;  %977 = vadd.xlane.f32.xlu0 %v976_v15  ;;  %v1375_v46 = vmul.f32 %v1827_v45, %v2188_v38  ;;  %v992_v38 = vmul.f32 1.442695, %v989_v53  ;;  %v2364_v14 = vld [vmem:[#allocation4 + $0x1] ss:$0 sm:$0xff] }
 0x304   : > { %1830 = vpow2.f32 %v992_v38 }
 0x305   : > { %1832 = vpow2.f32 %v1049_v57 }
 0x306   : > { %1037 = vadd.xlane.f32.xlu1 %v1036_v18  ;;  %1034 = vadd.xlane.f32.xlu0 %v1033_v20  ;;  %1834 = vpow2.f32 %v1106_v63  ;;  %v932_v18 = vmul.f32 1.442695, %v930_v8  ;;  %v2412_v8 = vld [vmem:[#allocation4 + $0x6] ss:$0 sm:$0xff] }
 0x307   : > { %1836 = vpow2.f32 %v1163_v9 }
 0x308   : > { %1838 = vpow2.f32 %v932_v18 }
 0x309   : > { %v1829_v59 = vpop.eup %1828  ;;  %1840 = vpow2.f32 %v1220_v21  ;;  %v2422_v21 = vld [vmem:[#allocation4 + $0x7] ss:$0 sm:$0xff] }
 0x30a   : > { %1094 = vadd.xlane.f32.xlu1 %v1093_v24  ;;  %1091 = vadd.xlane.f32.xlu0 %v1090_v25  ;;  %v937_v7 = vmul.f32 %v1829_v59, %v900_v60  ;;  %v2371_v24 = vld [vmem:[#allocation3 + $0x7] ss:$0 sm:$0xff]  ;;  %1842 = vpow2.f32 %v1277_v31  ;;  %v899_v59 = vld [vmem:[#allocation7] sm:$0xff] }
 0x30e   : > { %1151 = vadd.xlane.f32.xlu1 %v1150_v28  ;;  %1148 = vadd.xlane.f32.xlu0 %v1147_v29  ;;  %v1831_v13 = vpop.eup %1830  ;;  %v988_v29 = vmul.f32 %v1589_v51, %v2353_v61 }
 0x30f   : > { %v1833_v25 = vpop.eup %1832 }
 0x310   : > { %v1835_v34 = vpop.eup %1834  ;;  %v990_v40 = vmul.f32 1.442695, %v988_v29 }
 0x311   : > { %v1837_v45 = vpop.eup %1836 }
 0x312   : > { %1208 = vadd.xlane.f32.xlu1 %v1207_v32  ;;  %1205 = vadd.xlane.f32.xlu0 %v1204_v33  ;;  %v1331_v32 = vmul.f32 %v2371_v24, %v896_v48  ;;  %1844 = vpow2.f32 %v990_v40  ;;  %v1839_v53 = vpop.eup %1838 }
 0x313   : > { %v1841_v38 = vpop.eup %1840 }
 0x314   : > { %v1334_v43 = vmul.f32 1.442695, %v1331_v32 }
 0x316   : > { %1265 = vadd.xlane.f32.xlu1 %v1264_v36  ;;  %1262 = vadd.xlane.f32.xlu0 %v1261_v37  ;;  %1846 = vpow2.f32 %v1334_v43 }
 0x31a   : > { %1322 = vadd.xlane.f32.xlu1 %v1321_v41  ;;  %1319 = vadd.xlane.f32.xlu0 %v1318_v42  ;;  %v1045_v42 = vmul.f32 %v1592_v54, %v2353_v61 }
 0x31c   : > { %v1047_v51 = vmul.f32 1.442695, %v1045_v42 }
 0x31e   : > { %1848 = vpow2.f32 %v1047_v51 }
 0x330   : > { %1377 = vrot.lane.b32.xlu0 %v1375_v46, %s1943_s24  ;;  %v2392_v46 = vld [vmem:[#allocation4 + $0x4] ss:$0 sm:$0xff]  ;;  %s397_s24 = sand.u32 1, %s1922_s18  }
 0x331   : > { %s1550_s26 = sshll.u32 %s397_s24, 3  ;;  %s1460_s16 = scalar_lea.sflag [#allocation9], %s397_s24 }
 0x332   : > { %s399_s12 = scalar_lea.vmem [#allocation8], %s1550_s26  ;;  %s1864_s26 = sshll.u32 %s1944_s20, 4  ;;  %s1865_s26 = int_to_ptr.vmem [resolvable:$false] %s1864_s26 }
 0x333   : > { %s1474_s13 = sshll.u32 %s399_s12, 4  ;;  %s1866_s28 = scalar_lea.vmem %s1865_s26, 256  ;;  %s2494_s13 = int_to_ptr.vmem [resolvable:$true] %s1474_s13 }
 0x334   : > { %s1860_s23 = scalar_lea.vmem %s2494_s13, 128  ;;  %p1867_p1 = scmp.lt.s32.totalorder %s2494_s13, %s1865_s26 }
 0x335   : > { %p1861_p12 = scmp.ne.s32.totalorder %s2494_s13, %s1860_s23  ;;  %p1868_p2 = scmp.lt.s32.totalorder %s1866_s28, %s1860_s23 }
 0x337   : > { %p1862_p13 = pnand %p1861_p12, %p2045_p4  ;;  %p1869_p3 = por %p1868_p2, %p1867_p1 }
 0x339   : > { %p1863_p0 = pneg %p1862_p13 }
 0x33b   : > { %p1870_p5 = pnand %p1869_p3, %p1863_p0 }
 0x36b   : > { %v975_v2 = vpop.xlane.xlu1 %974  ;;  %v917_v4 = vpop.xlane.xlu0 %916 }
 0x36c   : > { %v943_v5 = vmul.f32 %v1587_v3, %v917_v4  ;;  %v1001_v17 = vmul.f32 %v2364_v14, %v975_v2  ;;  %v1104_v2 = vmul.f32 1.442695, %v1102_v52  ;;  %v936_v4 = vmul.f32 %v1839_v53, %v899_v59 }
 0x36e   : > { %v2360_v11 = vadd.f32 %v943_v5, %v937_v7  ;;  %v1843_v7 = vpop.eup %1842  ;;  %1850 = vpow2.f32 %v1104_v2 }
 0x36f   : > { %v1032_v15 = vpop.xlane.xlu1 %1031  ;;  %v914_v16 = vpop.xlane.xlu0 %913 }
 0x370   : > { %v995_v20 = vmul.f32 %v1831_v13, %v2360_v11  ;;  %v1058_v28 = vmul.f32 %v2373_v22, %v1032_v15  ;;  %v942_v60 = vmul.f32 %v1587_v3, %v914_v16  ;;  %v1161_v16 = vmul.f32 1.442695, %v1159_v56  ;;  %v1845_v6 = vpop.eup %1844 }
 0x372   : > { %v2369_v23 = vadd.f32 %v1001_v17, %v995_v20  ;;  %v944_v13 = vadd.f32 %v942_v60, %v936_v4  ;;  %v1216_v17 = vmul.f32 %v2356_v1, %v2353_v61  ;;  %v1847_v20 = vpop.eup %1846  ;;  %1852 = vpow2.f32 %v1161_v16 }
 0x373   : > { %v1089_v26 = vpop.xlane.xlu1 %1088  ;;  %v2375_v27 = vpop.xlane.xlu0 %1028  ;;  %v1273_v1 = vmul.f32 %v2362_v12, %v2353_v61  ;;  %v1330_v12 = vmul.f32 %v2371_v24, %v2353_v61 }
 0x374   : > { %v1052_v30 = vmul.f32 %v1833_v25, %v2369_v23  ;;  %v1115_v39 = vmul.f32 %v2383_v35, %v1089_v26  ;;  %v994_v29 = vmul.f32 %v1845_v6, %v944_v13  ;;  %v1218_v31 = vmul.f32 1.442695, %v1216_v17 }
 0x375   : > { %v1332_v60 = vmul.f32 1.442695, %v1330_v12 }
 0x376   : > { %v2381_v33 = vadd.f32 %v1058_v28, %v1052_v30  ;;  %1854 = vpow2.f32 %v1218_v31 }
 0x377   : > { %v1146_v36 = vpop.xlane.xlu1 %1145  ;;  %v2385_v37 = vpop.xlane.xlu0 %1085 }
 0x378   : > { %v1109_v41 = vmul.f32 %v1835_v34, %v2381_v33  ;;  %v1172_v49 = vmul.f32 %v2392_v46, %v1146_v36  ;;  %v1849_v36 = vpop.eup %1848 }
 0x379   : > { %v1851_v51 = vpop.eup %1850 }
 0x37a   : > { %v2390_v44 = vadd.f32 %v1115_v39, %v1109_v41  ;;  %v1057_v41 = vmul.f32 %v2373_v22, %v2375_v27 }
 0x37b   : > { %v1203_v47 = vpop.xlane.xlu1 %1202  ;;  %v2394_v48 = vpop.xlane.xlu0 %1142 }
 0x37c   : > { %v1166_v50 = vmul.f32 %v1837_v45, %v2390_v44  ;;  %v1229_v63 = vmul.f32 %v2402_v55, %v1203_v47  ;;  %v1275_v45 = vmul.f32 1.442695, %v1273_v1 }
 0x37e   : > { %v2400_v54 = vadd.f32 %v1172_v49, %v1166_v50  ;;  %1856 = vpow2.f32 %v1275_v45 }
 0x37f   : > { %v1260_v57 = vpop.xlane.xlu1 %1259  ;;  %v2404_v58 = vpop.xlane.xlu0 %1199  ;;  %1858 = vpow2.f32 %v1332_v60 }
 0x380   : > { %v1223_v0 = vmul.f32 %v1841_v38, %v2400_v54  ;;  %v1286_v3 = vmul.f32 %v2412_v8, %v1260_v57 }
 0x382   : > { %v2410_v5 = vadd.f32 %v1229_v63, %v1223_v0  ;;  %v1853_v0 = vpop.eup %1852 }
 0x383   : > { %v1317_v9 = vpop.xlane.xlu1 %1316  ;;  %v2414_v10 = vpop.xlane.xlu0 %1256 }
 0x384   : > { %v1280_v15 = vmul.f32 %v1843_v7, %v2410_v5  ;;  %v1343_v26 = vmul.f32 %v2422_v21, %v1317_v9  ;;  %v1855_v6 = vpop.eup %1854 }
 0x386   : > { %v2420_v18 = vadd.f32 %v1286_v3, %v1280_v15 }
 0x387   : > { %v972_v19 = vpop.xlane.xlu1 %971  ;;  %v2424_v25 = vpop.xlane.xlu0 %1313 }
 0x388   : > { %v1000_v28 = vmul.f32 %v2364_v14, %v972_v19  ;;  %v1337_v30 = vmul.f32 %v1847_v20, %v2420_v18 }
 0x38a   : > { %v1002_v32 = vadd.f32 %v1000_v28, %v994_v29  ;;  %v2431_v34 = vadd.f32 %v1343_v26, %v1337_v30 }
 0x38b   : > { %v923_v39 = vpop.xlane.xlu1 %922  ;;  %v920_v40 = vpop.xlane.xlu0 %919 }
 0x38c   : > { %v947_v42 = vmul.f32 %v2360_v11, %v923_v39  ;;  %v946_v14 = vmul.f32 %v944_v13, %v920_v40  ;;  %v1051_v43 = vmul.f32 %v1849_v36, %v1002_v32  ;;  %1359 = vst.msk [vmem:[#allocation7 + $0x8] sm:$0xff] %vm411_vm2, %v2431_v34  ;;  %v1114_v11 = vmul.f32 %v2383_v35, %v2385_v37 }
 0x38d   : > { %v1171_v35 = vmul.f32 %v2392_v46, %v2394_v48  ;;  %v1228_v46 = vmul.f32 %v2402_v55, %v2404_v58 }
 0x38e   : > { %v949_v47 = vsel %vm411_vm2, %v947_v42, 0.0  ;;  %v948_v49 = vsel %vm411_vm2, %v946_v14, 0.0  ;;  %v1059_v50 = vadd.f32 %v1057_v41, %v1051_v43  ;;  %v1857_v41 = vpop.eup %1856 }
 0x38f   : > { %v950_v52 = vadd.f32 %v949_v47, %v948_v49  ;;  %v981_v22 = vpop.xlane.xlu1 %980  ;;  %v978_v27 = vpop.xlane.xlu0 %977 }
 0x390   : > { %v1005_v53 = vmul.f32 %v2369_v23, %v981_v22  ;;  %v1004_v38 = vmul.f32 %v1002_v32, %v978_v27  ;;  %v1108_v57 = vmul.f32 %v1851_v51, %v1059_v50 }
 0x391   : > { %v951_v59 = vrot.slane %v950_v52, 4 }
 0x392   : > { %v1007_v61 = vsel %vm411_vm2, %v1005_v53, 0.0  ;;  %v1006_v24 = vsel %vm411_vm2, %v1004_v38, 0.0  ;;  %v1116_v63 = vadd.f32 %v1114_v11, %v1108_v57  ;;  %v1859_v53 = vpop.eup %1858 }
 0x393   : > { %v952_v2 = vadd.f32 %v951_v59, %v950_v52  ;;  %v1008_v56 = vadd.f32 %v1007_v61, %v1006_v24  ;;  %v1038_v4 = vpop.xlane.xlu1 %1037  ;;  %v1035_v7 = vpop.xlane.xlu0 %1034 }
 0x394   : > { %v1062_v23 = vmul.f32 %v2381_v33, %v1038_v4  ;;  %v1061_v37 = vmul.f32 %v1059_v50, %v1035_v7  ;;  %v1165_v9 = vmul.f32 %v1853_v0, %v1116_v63 }
 0x395   : > { %v953_v3 = vrot.slane %v952_v2, 2  ;;  %v1009_v13 = vrot.slane %v1008_v56, 4 }
 0x396   : > { %v1064_v15 = vsel %vm411_vm2, %v1062_v23, 0.0  ;;  %v1063_v16 = vsel %vm411_vm2, %v1061_v37, 0.0  ;;  %v1173_v17 = vadd.f32 %v1171_v35, %v1165_v9 }
 0x397   : > { %v954_v20 = vadd.f32 %v953_v3, %v952_v2  ;;  %v1010_v19 = vadd.f32 %v1009_v13, %v1008_v56  ;;  %v1065_v26 = vadd.f32 %v1064_v15, %v1063_v16  ;;  %v1095_v28 = vpop.xlane.xlu1 %1094  ;;  %v1092_v29 = vpop.xlane.xlu0 %1091 }
 0x398   : > { %v1119_v33 = vmul.f32 %v2390_v44, %v1095_v28  ;;  %v1118_v48 = vmul.f32 %v1116_v63, %v1092_v29  ;;  %v1222_v30 = vmul.f32 %v1855_v6, %v1173_v17  ;;  %v1285_v44 = vmul.f32 %v2412_v8, %v2414_v10 }
 0x399   : > { %v955_v31 = vrot.slane %v954_v20, 1  ;;  %v1011_v1 = vrot.slane %v1010_v19, 2  ;;  %v1066_v32 = vrot.slane %v1065_v26, 4 }
 0x39a   : > { %v1121_v36 = vsel %vm411_vm2, %v1119_v33, 0.0  ;;  %v1120_v39 = vsel %vm411_vm2, %v1118_v48, 0.0  ;;  %v1230_v40 = vadd.f32 %v1228_v46, %v1222_v30 }
 0x39b   : > { %v956_v42 = vadd.f32 %v955_v31, %v954_v20  ;;  %v1012_v14 = vadd.f32 %v1011_v1, %v1010_v19  ;;  %v1067_v43 = vadd.f32 %v1066_v32, %v1065_v26  ;;  %v1122_v45 = vadd.f32 %v1121_v36, %v1120_v39  ;;  %v1152_v12 = vpop.xlane.xlu1 %1151  ;;  %v1149_v55 = vpop.xlane.xlu0 %1148 }
 0x39c   : > { %v1176_v58 = vmul.f32 %v2400_v54, %v1152_v12  ;;  %v1175_v47 = vmul.f32 %v1173_v17, %v1149_v55  ;;  %v1279_v49 = vmul.f32 %v1857_v41, %v1230_v40  ;;  %v1342_v54 = vmul.f32 %v2422_v21, %v2424_v25 }
 0x39d   : > { %958 = vst.msk [vmem:[#allocation6] sm:$0x1] %vm957_vm14, %v956_v42  ;;  %v1013_v50 = vrot.slane %v1012_v14, 1  ;;  %v1068_v51 = vrot.slane %v1067_v43, 2  ;;  %v1123_v52 = vrot.slane %v1122_v45, 4 }
 0x39e   : > { %v1178_v22 = vsel %vm411_vm2, %v1176_v58, 0.0  ;;  %v1177_v27 = vsel %vm411_vm2, %v1175_v47, 0.0  ;;  %v1287_v11 = vadd.f32 %v1285_v44, %v1279_v49 }
 0x39f   : > { %v1014_v38 = vadd.f32 %v1013_v50, %v1012_v14  ;;  %v1069_v57 = vadd.f32 %v1068_v51, %v1067_v43  ;;  %v1124_v59 = vadd.f32 %v1123_v52, %v1122_v45  ;;  %v1179_v60 = vadd.f32 %v1178_v22, %v1177_v27  ;;  %v1209_v8 = vpop.xlane.xlu1 %1208  ;;  %v1206_v10 = vpop.xlane.xlu0 %1205  ;;  %v1609_v52 = vld [vmem:[%s2549_s9] ss:$0 sm:$0xff] }
 0x3a0   : > { %v1233_v61 = vmul.f32 %v2410_v5, %v1209_v8  ;;  %v1232_v24 = vmul.f32 %v1230_v40, %v1206_v10  ;;  %v1336_v63 = vmul.f32 %v1859_v53, %v1287_v11  ;;  %v1368_v22 = vmul.f32 %v1609_v52, %v2207_v62 }
 0x3a1   : > { %1015 = vst.msk [vmem:[#allocation6 + $0x1] sm:$0x1] %vm957_vm14, %v1014_v38  ;;  %v1070_v0 = vrot.slane %v1069_v57, 1  ;;  %v1125_v2 = vrot.slane %v1124_v59, 2  ;;  %v1180_v56 = vrot.slane %v1179_v60, 4 }
 0x3a2   : > { %v1235_v4 = vsel %vm411_vm2, %v1233_v61, 0.0  ;;  %v1234_v7 = vsel %vm411_vm2, %v1232_v24, 0.0  ;;  %v1344_v35 = vadd.f32 %v1342_v54, %v1336_v63 }
 0x3a3   : > { %v1071_v23 = vadd.f32 %v1070_v0, %v1069_v57  ;;  %v1126_v37 = vadd.f32 %v1125_v2, %v1124_v59  ;;  %v1181_v9 = vadd.f32 %v1180_v56, %v1179_v60  ;;  %v1236_v3 = vadd.f32 %v1235_v4, %v1234_v7  ;;  %v1266_v13 = vpop.xlane.xlu1 %1265  ;;  %v1263_v21 = vpop.xlane.xlu0 %1262 }
 0x3a4   : > { %v1290_v5 = vmul.f32 %v2420_v18, %v1266_v13  ;;  %v1289_v25 = vmul.f32 %v1287_v11, %v1263_v21  ;;  %1358 = vst.msk [vmem:[#allocation7] sm:$0xff] %vm411_vm2, %v1344_v35 }
 0x3a5   : > { %1072 = vst.msk [vmem:[#allocation6 + $0x2] sm:$0x1] %vm957_vm14, %v1071_v23  ;;  %v1127_v15 = vrot.slane %v1126_v37, 1  ;;  %v1182_v16 = vrot.slane %v1181_v9, 2  ;;  %v1237_v17 = vrot.slane %v1236_v3, 4 }
 0x3a6   : > { %v1292_v6 = vsel %vm411_vm2, %v1290_v5, 0.0  ;;  %v1291_v20 = vsel %vm411_vm2, %v1289_v25, 0.0 }
 0x3a7   : > { %v1128_v19 = vadd.f32 %v1127_v15, %v1126_v37  ;;  %v1183_v26 = vadd.f32 %v1182_v16, %v1181_v9  ;;  %v1238_v28 = vadd.f32 %v1237_v17, %v1236_v3  ;;  %v1293_v29 = vadd.f32 %v1292_v6, %v1291_v20  ;;  %v1323_v46 = vpop.xlane.xlu1 %1322  ;;  %v1320_v33 = vpop.xlane.xlu0 %1319 }
 0x3a8   : > { %v1347_v18 = vmul.f32 %v2431_v34, %v1323_v46  ;;  %v1346_v48 = vmul.f32 %v1344_v35, %v1320_v33 }
 0x3a9   : > { %1129 = vst.msk [vmem:[#allocation6 + $0x3] sm:$0x1] %vm957_vm14, %v1128_v19  ;;  %v1184_v30 = vrot.slane %v1183_v26, 1  ;;  %v1239_v31 = vrot.slane %v1238_v28, 2  ;;  %v1294_v1 = vrot.slane %v1293_v29, 4 }
 0x3aa   : > { %v1349_v32 = vsel %vm411_vm2, %v1347_v18, 0.0  ;;  %v1348_v36 = vsel %vm411_vm2, %v1346_v48, 0.0 }
 0x3ab   : > { %v1185_v39 = vadd.f32 %v1184_v30, %v1183_v26  ;;  %v1240_v40 = vadd.f32 %v1239_v31, %v1238_v28  ;;  %v1295_v41 = vadd.f32 %v1294_v1, %v1293_v29  ;;  %v1350_v42 = vadd.f32 %v1349_v32, %v1348_v36  ;;  %v1378_v53 = vpop.permute.xlu0 %1377 }
 0x3ad   : > { %1186 = vst.msk [vmem:[#allocation6 + $0x4] sm:$0x1] %vm957_vm14, %v1185_v39  ;;  %v1241_v14 = vrot.slane %v1240_v40, 1  ;;  %v1296_v43 = vrot.slane %v1295_v41, 2  ;;  %v1351_v45 = vrot.slane %v1350_v42, 4 }
 0x3af   : > { %v1242_v34 = vadd.f32 %v1241_v14, %v1240_v40  ;;  %v1297_v12 = vadd.f32 %v1296_v43, %v1295_v41  ;;  %v1352_v55 = vadd.f32 %v1351_v45, %v1350_v42 }
 0x3b1   : > { %1243 = vst.msk [vmem:[#allocation6 + $0x5] sm:$0x1] %vm957_vm14, %v1242_v34  ;;  %v1298_v44 = vrot.slane %v1297_v12, 1  ;;  %v1353_v58 = vrot.slane %v1352_v55, 2 }
 0x3b3   : > { %v1299_v47 = vadd.f32 %v1298_v44, %v1297_v12  ;;  %v1354_v49 = vadd.f32 %v1353_v58, %v1352_v55 }
 0x3b5   : > { %1300 = vst.msk [vmem:[#allocation6 + $0x6] sm:$0x1] %vm957_vm14, %v1299_v47  ;;  %v1355_v50 = vrot.slane %v1354_v49, 1 }
 0x3b7   : > { %v1356_v51 = vadd.f32 %v1355_v50, %v1354_v49 }
 0x3b9   : > { %1357 = vst.msk [vmem:[#allocation6 + $0x7] sm:$0x1] %vm957_vm14, %v1356_v51 }
 0x3c0   : > { %v1360_v27 = vld [vmem:[#allocation6] sm:$0xff] }
 0x3c1   : > { %v1369_v11 = vadd.f32 %v1368_v22, %v1360_v27 }
 0x3c3   : > { %v1380_v38 = vmul.f32 %v1378_v53, %v1369_v11 }
 0x3c5   : > { %1712 = vmatmul.mubr.msk.f32.vlgmr.msra.gmra.mrb[8].mxu0 %vm411_vm2, %v1380_v38 }
 0x498   : > { %v1454_v62 = vpop.f32.mrb[8].mxu0 }
 0x499   : > { %1458 = vst.msk [vmem:[%s399_s12] sm:$0xff] %vm428_vm0, %v1454_v62  ;;  %v1713_v57 = vpop.f32.mrb[9].mxu0 }
 0x49a   : > { %1873 = shalt.err (!%p1870_p5)
}
 0x49b   : > { %s1874_s24 = scalar_lea.hbm %s2492_s0, 128  ;;  %s1878_s15 = scalar_lea.hbm %s2551_s11, 256 }
 0x49c   : > { %p1875_p6 = scmp.ne.s32.totalorder %s2492_s0, %s1874_s24  ;;  %p1879_p10 = scmp.lt.u32.totalorder %s2492_s0, %s2551_s11 }
 0x49d   : > { %p1880_p11 = scmp.lt.u32.totalorder %s1878_s15, %s1874_s24  ;;  %p1882_p13 = scmp.lt.u32.totalorder %s1874_s24, %s2492_s0 }
 0x49e   : > { %p1876_p7 = pnand %p1875_p6, %p2045_p4 }
 0x49f   : > { %p1881_p12 = por %p1880_p11, %p1879_p10 }
 0x4a0   : > { %p1877_p9 = pneg %p1876_p7 }
 0x4a1   : > { %p1883_p0 = por %p1882_p13, %p1881_p12 }
 0x4a3   : > { %p1884_p1 = pnand %p1883_p0, %p1877_p9 }
 0x4a5   : > { %1887 = shalt.err (!%p1884_p1)
}
 0x4a6   : > { %1757 = dma.vmem_to_hbm [thread:$0]  (%p2045_p4), %s2494_s13, 128, %s2492_s0, %s1460_s16  }
 0x4a7 PF: > { %p1763_p2 = scmp.ge.s32.totalorder %s1938_s22, 2  ;;  %s1486_s23 = sand.u32 1, %s1918_s17  }
 0x4a8   : > { %s1487_s28 = scalar_lea.sflag [#allocation9], %s1486_s23 }
 0x4a9   : > { %p1760_p3 = pnand %p1763_p2, %p2052_p8 }
 0x4ab   : > { %1913 = dma.done.wait (!%p1760_p3), %s1487_s28, 128  }
 0x4ac   : > { %1915 = vsyncadd (!%p1760_p3), %s1487_s28, 4294967168  ;;  %s24_s22 = sadd.s32 1, %s1938_s22   ;;  %s2560_s17 = smov %s1922_s18 }
 0x4ad   : > { %p21_p5 = scmp.ge.s32.totalorder %s24_s22, 4   ;;  %s2561_s18 = smov %s1926_s19 }
 0x4ae   : > { %s2562_s19 = smov %s2058_s30  ;;  %s2563_s20 = smov %s1934_s21 }
 0x4af   : > { %s2564_s21 = smov %s2566_s25  ;;  %23 = sbr.rel (!%p21_p5) target bundleno = 6 (0x6), region = 107 }
 0x4b6   :  { %1492 = vsyncpa [#allocation9], 1 }
 0x4b7   :  { %1494 = vsyncpa [#allocation9 + $0x1], 1 }

</bundles_post_ra>
